<compile_context>
chip_gen: v6e
topology: v6e:2x2x1
jax: 0.10.0
libtpu: 0.0.40
codegen_flags: <defaults>
</compile_context>

<pallas_src>
import jax
import jax.numpy as jnp
from jax.experimental import pallas as pl
from jax.experimental.pallas import tpu as pltpu

INPUT_DIM = 1024
HID1 = 512
HID2 = 128
OUTPUT_DIM = 16
HEAD_DIM = 2 * OUTPUT_DIM           # fused [means | stds] head

TM_MAX = 512                        # batch tile cap: fits v5e 16 MiB scoped VMEM,
                                    # amortizes per-step overhead on v6e/v7x
MATMUL_DTYPE = jnp.bfloat16         # MXU input dtype (accumulation stays f32)

_INV_SQRT2 = 0.7071067811865476
_SQRT_2_OVER_PI = 0.7978845608028654

# tanh-approx GELU (EUP path) by default; exact erf available for strict
# nn.GELU() parity (difference vs erf is ~1e-3, below the bf16 matmul error).
USE_EXACT_GELU = False


def _gelu(x):
    if USE_EXACT_GELU:
        # PyTorch nn.GELU() default = exact erf formulation.
        return 0.5 * x * (1.0 + jax.lax.erf(x * _INV_SQRT2))
    # tanh approximation: the transcendental runs on the EUP slot, freeing VALU.
    return 0.5 * x * (1.0 + jnp.tanh(_SQRT_2_OVER_PI * (x + 0.044715 * (x * x * x))))


def _cdiv(a, b):
    return (a + b - 1) // b


def _round_up(n, m):
    return ((n + m - 1) // m) * m


def encoder_kernel(x_ref, w1_ref, b1_ref, w2_ref, b2_ref, wh_ref, bh_ref,
                   out_ref):
    # In-kernel cast: x arrives as f32 straight from HBM (no wrapper cast pass).
    x = x_ref[...].astype(MATMUL_DTYPE)                               # (TM, 1024) bf16

    h1 = jnp.dot(x, w1_ref[...], preferred_element_type=jnp.float32)
    h1 = _gelu(h1 + b1_ref[...])                                      # (TM, 512) f32

    h2 = jnp.dot(h1.astype(MATMUL_DTYPE), w2_ref[...],
                 preferred_element_type=jnp.float32)
    h2 = _gelu(h2 + b2_ref[...])                                      # (TM, 128) f32

    head = jnp.dot(h2.astype(MATMUL_DTYPE), wh_ref[...],
                   preferred_element_type=jnp.float32) + bh_ref[...]  # (TM, 32) f32

    # First 16 lanes = z_loc (identity), last 16 lanes = z_scale (exp(.)).
    # Lane-select keeps full-tile VPU/EUP ops (no sub-vreg slicing/concat).
    col = jax.lax.broadcasted_iota(jnp.int32, head.shape, 1)
    out_ref[...] = jnp.where(col < OUTPUT_DIM, head, jnp.exp(head)).astype(out_ref.dtype)


def pack_params(params):
    """One-time packing of the raw f32 params into kernel-ready operands.

    Call this once (at init / param update), NOT per forward call: it casts
    matmul operands to bf16, keeps biases in f32, and fuses the two heads.
    """
    return {
        "w1": params["w1"].astype(MATMUL_DTYPE),
        "b1": params["b1"].astype(jnp.float32).reshape(1, HID1),
        "w2": params["w2"].astype(MATMUL_DTYPE),
        "b2": params["b2"].astype(jnp.float32).reshape(1, HID2),
        "wh": jnp.concatenate([params["wm"], params["ws"]],
                              axis=1).astype(MATMUL_DTYPE),
        "bh": jnp.concatenate([params["bm"], params["bs"]],
                              axis=1).astype(jnp.float32).reshape(1, HEAD_DIM),
    }


def encoder_forward(x, packed):
    """x: any shape whose total size is divisible by INPUT_DIM (like torch reshape).

    `packed` is the output of pack_params() — cache it across calls.
    """
    x2d = x.reshape(-1, INPUT_DIM)      # keep original dtype; cast happens in-kernel
    B = x2d.shape[0]

    # Balanced batch tiles: minimal padding for ragged B; B > TM_MAX always
    # gives >= 2 grid steps (so v7x's two TensorCores both get work).
    num_tiles = max(1, _cdiv(B, TM_MAX))
    tm = _round_up(_cdiv(B, num_tiles), 8)
    b_pad = num_tiles * tm
    if b_pad != B:
        # Padded rows are zeros -> finite outputs, sliced off below.
        x2d = jnp.pad(x2d, ((0, b_pad - B), (0, 0)))

    const = lambda i: (0, 0)   # weights/biases: block index never changes -> fetched once

    out = pl.pallas_call(
        encoder_kernel,
        out_shape=jax.ShapeDtypeStruct((b_pad, HEAD_DIM), jnp.float32),
        grid_spec=pltpu.PrefetchScalarGridSpec(
            num_scalar_prefetch=0,
            grid=(num_tiles,),
            in_specs=[
                pl.BlockSpec((tm, INPUT_DIM), lambda i: (i, 0)),     # x tile (pipelined, f32)
                pl.BlockSpec((INPUT_DIM, HID1), const),              # W1 (resident)
                pl.BlockSpec((1, HID1), const),                      # b1
                pl.BlockSpec((HID1, HID2), const),                   # W2
                pl.BlockSpec((1, HID2), const),                      # b2
                pl.BlockSpec((HID2, HEAD_DIM), const),               # [Wm | Ws]
                pl.BlockSpec((1, HEAD_DIM), const),                  # [bm | bs]
            ],
            out_specs=pl.BlockSpec((tm, HEAD_DIM), lambda i: (i, 0)),
        ),
        compiler_params=pltpu.CompilerParams(
            dimension_semantics=("parallel",),   # v7x: shard batch over both TCs
        ),
    )(x2d, packed["w1"], packed["b1"], packed["w2"], packed["b2"],
      packed["wh"], packed["bh"])

    z_loc = out[:B, :OUTPUT_DIM]
    z_scale = out[:B, OUTPUT_DIM:]
    return z_loc, z_scale


def init_params(key):
    """Deterministic synthetic params matching nn.Linear shapes (stored transposed)."""
    ks = jax.random.split(key, 8)

    def lin(kw, kb, fan_in, fan_out):
        bound = 1.0 / jnp.sqrt(float(fan_in))
        w = jax.random.uniform(kw, (fan_in, fan_out), jnp.float32, -bound, bound)
        b = jax.random.uniform(kb, (1, fan_out), jnp.float32, -bound, bound)
        return w, b

    w1, b1 = lin(ks[0], ks[1], INPUT_DIM, HID1)
    w2, b2 = lin(ks[2], ks[3], HID1, HID2)
    wm, bm = lin(ks[4], ks[5], HID2, OUTPUT_DIM)
    ws, bs = lin(ks[6], ks[7], HID2, OUTPUT_DIM)
    return {"w1": w1, "b1": b1, "w2": w2, "b2": b2,
            "wm": wm, "bm": bm, "ws": ws, "bs": bs}


def encoder_reference(x, params, matmul_dtype=jnp.float32):
    """Pure-JAX reference mirroring the kernel's MXU dtype and GELU flavor."""
    x2d = x.reshape(-1, INPUT_DIM).astype(matmul_dtype)
    w1 = params["w1"].astype(matmul_dtype)
    w2 = params["w2"].astype(matmul_dtype)
    wm = params["wm"].astype(matmul_dtype)
    ws = params["ws"].astype(matmul_dtype)

    h = _gelu(jnp.dot(x2d, w1, preferred_element_type=jnp.float32) + params["b1"])
    h = _gelu(jnp.dot(h.astype(matmul_dtype), w2,
                      preferred_element_type=jnp.float32) + params["b2"])
    hq = h.astype(matmul_dtype)
    z_loc = jnp.dot(hq, wm, preferred_element_type=jnp.float32) + params["bm"]
    z_scale = jnp.exp(jnp.dot(hq, ws, preferred_element_type=jnp.float32) + params["bs"])
    return z_loc, z_scale


if __name__ == "__main__":
    key = jax.random.PRNGKey(0)
    k_x, k_p, k_x2 = jax.random.split(key, 3)

    params = init_params(k_p)
    packed = pack_params(params)       # one-time packing; reuse across calls

    # 2*4*16*16 = 2048 elements -> reshapes to (2, 1024)
    x = jax.random.normal(k_x, (2, 4, 16, 16), dtype=jnp.float32)
    z_loc, z_scale = encoder_forward(x, packed)
    jax.block_until_ready((z_loc, z_scale))

    assert z_loc.shape == (2, OUTPUT_DIM) and z_scale.shape == (2, OUTPUT_DIM)
    ref_loc, ref_scale = encoder_reference(x, params, matmul_dtype=MATMUL_DTYPE)
    assert jnp.allclose(z_loc, ref_loc, atol=2e-3, rtol=2e-3)
    assert jnp.allclose(z_scale, ref_scale, atol=2e-3, rtol=2e-3)
    assert bool(jnp.all(jnp.isfinite(z_loc))) and bool(jnp.all(jnp.isfinite(z_scale)))

    # Larger ragged batch exercises balanced tiling (300 -> 1 tile of 304, 4 pad rows).
    x_big = jax.random.normal(k_x2, (300, INPUT_DIM), dtype=jnp.float32)
    zl2, zs2 = encoder_forward(x_big, packed)
    jax.block_until_ready((zl2, zs2))
    rl2, rs2 = encoder_reference(x_big, params, matmul_dtype=MATMUL_DTYPE)
    assert zl2.shape == (300, OUTPUT_DIM) and zs2.shape == (300, OUTPUT_DIM)
    assert jnp.allclose(zl2, rl2, atol=2e-3, rtol=2e-3)
    assert jnp.allclose(zs2, rs2, atol=2e-3, rtol=2e-3)

    # Batch > TM_MAX exercises the multi-tile pipelined / megacore-parallel path.
    x_multi = jax.random.normal(k_x2, (1024, INPUT_DIM), dtype=jnp.float32)
    zl3, zs3 = encoder_forward(x_multi, packed)
    jax.block_until_ready((zl3, zs3))
    rl3, rs3 = encoder_reference(x_multi, params, matmul_dtype=MATMUL_DTYPE)
    assert jnp.allclose(zl3, rl3, atol=2e-3, rtol=2e-3)
    assert jnp.allclose(zs3, rs3, atol=2e-3, rtol=2e-3)

    print("KERNEL_OK")
</pallas_src>

<mosaic_0001>
module attributes {stable_mosaic.version = 11 : i64} {
  func.func @encoder_kernel(%arg0: i32, %arg1: memref<8x1024xf32, #tpu.memory_space<vmem>>, %arg2: memref<1024x512xbf16, #tpu.memory_space<vmem>>, %arg3: memref<1x512xf32, #tpu.memory_space<vmem>>, %arg4: memref<512x128xbf16, #tpu.memory_space<vmem>>, %arg5: memref<1x128xf32, #tpu.memory_space<vmem>>, %arg6: memref<128x32xbf16, #tpu.memory_space<vmem>>, %arg7: memref<1x32xf32, #tpu.memory_space<vmem>>, %arg8: memref<8x32xf32, #tpu.memory_space<vmem>>) attributes {dimension_semantics = [#tpu.dimension_semantics<parallel>], iteration_bounds = array<i64: 1>, scalar_prefetch = 0 : i64, scratch_operands = 0 : i64, tpu.core_type = #tpu.core_type<tc>, window_params = [{transform_indices = @transform_0, window_bounds = array<i64: 8, 1024>}, {pipeline_mode = #tpu.pipeline_mode<synchronous>, transform_indices = @transform_1, window_bounds = array<i64: 1024, 512>}, {pipeline_mode = #tpu.pipeline_mode<synchronous>, transform_indices = @transform_2, window_bounds = array<i64: 1, 512>}, {pipeline_mode = #tpu.pipeline_mode<synchronous>, transform_indices = @transform_3, window_bounds = array<i64: 512, 128>}, {pipeline_mode = #tpu.pipeline_mode<synchronous>, transform_indices = @transform_4, window_bounds = array<i64: 1, 128>}, {pipeline_mode = #tpu.pipeline_mode<synchronous>, transform_indices = @transform_5, window_bounds = array<i64: 128, 32>}, {pipeline_mode = #tpu.pipeline_mode<synchronous>, transform_indices = @transform_6, window_bounds = array<i64: 1, 32>}, {transform_indices = @transform_7, window_bounds = array<i64: 8, 32>}]} {
    %c0 = arith.constant 0 : index
    %c0_0 = arith.constant 0 : index
    %0 = vector.load %arg1[%c0, %c0_0] : memref<8x1024xf32, #tpu.memory_space<vmem>>, vector<8x1024xf32>
    %1 = arith.truncf %0 : vector<8x1024xf32> to vector<8x1024xbf16>
    %c0_1 = arith.constant 0 : index
    %c0_2 = arith.constant 0 : index
    %2 = vector.load %arg2[%c0_1, %c0_2] : memref<1024x512xbf16, #tpu.memory_space<vmem>>, vector<1024x512xbf16>
    %cst = arith.constant dense<0.000000e+00> : vector<8x512xf32>
    %3 = tpu.matmul %1, %2, %cst {dimension_numbers = #tpu.dot_dimension_numbers<[1], [0], [0], [1], [0, 0, 1, 1], [], []>} : vector<8x1024xbf16>, vector<1024x512xbf16>, vector<8x512xf32> -> vector<8x512xf32>
    %c0_3 = arith.constant 0 : index
    %c0_4 = arith.constant 0 : index
    %4 = vector.load %arg3[%c0_3, %c0_4] : memref<1x512xf32, #tpu.memory_space<vmem>>, vector<1x512xf32>
    %5 = vector.broadcast %4 : vector<1x512xf32> to vector<8x512xf32>
    %6 = arith.addf %3, %5 : vector<8x512xf32>
    %cst_5 = arith.constant 5.000000e-01 : f32
    %7 = vector.broadcast %cst_5 : f32 to vector<8x512xf32>
    %8 = arith.mulf %7, %6 : vector<8x512xf32>
    %9 = arith.mulf %6, %6 : vector<8x512xf32>
    %10 = arith.mulf %9, %6 : vector<8x512xf32>
    %cst_6 = arith.constant 4.471500e-02 : f32
    %11 = vector.broadcast %cst_6 : f32 to vector<8x512xf32>
    %12 = arith.mulf %11, %10 : vector<8x512xf32>
    %13 = arith.addf %6, %12 : vector<8x512xf32>
    %cst_7 = arith.constant 0.797884583 : f32
    %14 = vector.broadcast %cst_7 : f32 to vector<8x512xf32>
    %15 = arith.mulf %14, %13 : vector<8x512xf32>
    %16 = math.tanh %15 : vector<8x512xf32>
    %cst_8 = arith.constant 1.000000e+00 : f32
    %17 = vector.broadcast %cst_8 : f32 to vector<8x512xf32>
    %18 = arith.addf %17, %16 : vector<8x512xf32>
    %19 = arith.mulf %8, %18 : vector<8x512xf32>
    %20 = arith.truncf %19 : vector<8x512xf32> to vector<8x512xbf16>
    %c0_9 = arith.constant 0 : index
    %c0_10 = arith.constant 0 : index
    %21 = vector.load %arg4[%c0_9, %c0_10] : memref<512x128xbf16, #tpu.memory_space<vmem>>, vector<512x128xbf16>
    %cst_11 = arith.constant dense<0.000000e+00> : vector<8x128xf32>
    %22 = tpu.matmul %20, %21, %cst_11 {dimension_numbers = #tpu.dot_dimension_numbers<[1], [0], [0], [1], [0, 0, 1, 1], [], []>} : vector<8x512xbf16>, vector<512x128xbf16>, vector<8x128xf32> -> vector<8x128xf32>
    %c0_12 = arith.constant 0 : index
    %c0_13 = arith.constant 0 : index
    %23 = vector.load %arg5[%c0_12, %c0_13] : memref<1x128xf32, #tpu.memory_space<vmem>>, vector<1x128xf32>
    %24 = vector.broadcast %23 : vector<1x128xf32> to vector<8x128xf32>
    %25 = arith.addf %22, %24 : vector<8x128xf32>
    %cst_14 = arith.constant 5.000000e-01 : f32
    %26 = vector.broadcast %cst_14 : f32 to vector<8x128xf32>
    %27 = arith.mulf %26, %25 : vector<8x128xf32>
    %28 = arith.mulf %25, %25 : vector<8x128xf32>
    %29 = arith.mulf %28, %25 : vector<8x128xf32>
    %cst_15 = arith.constant 4.471500e-02 : f32
    %30 = vector.broadcast %cst_15 : f32 to vector<8x128xf32>
    %31 = arith.mulf %30, %29 : vector<8x128xf32>
    %32 = arith.addf %25, %31 : vector<8x128xf32>
    %cst_16 = arith.constant 0.797884583 : f32
    %33 = vector.broadcast %cst_16 : f32 to vector<8x128xf32>
    %34 = arith.mulf %33, %32 : vector<8x128xf32>
    %35 = math.tanh %34 : vector<8x128xf32>
    %cst_17 = arith.constant 1.000000e+00 : f32
    %36 = vector.broadcast %cst_17 : f32 to vector<8x128xf32>
    %37 = arith.addf %36, %35 : vector<8x128xf32>
    %38 = arith.mulf %27, %37 : vector<8x128xf32>
    %39 = arith.truncf %38 : vector<8x128xf32> to vector<8x128xbf16>
    %c0_18 = arith.constant 0 : index
    %c0_19 = arith.constant 0 : index
    %40 = vector.load %arg6[%c0_18, %c0_19] : memref<128x32xbf16, #tpu.memory_space<vmem>>, vector<128x32xbf16>
    %cst_20 = arith.constant dense<0.000000e+00> : vector<8x32xf32>
    %41 = tpu.matmul %39, %40, %cst_20 {dimension_numbers = #tpu.dot_dimension_numbers<[1], [0], [0], [1], [0, 0, 1, 1], [], []>} : vector<8x128xbf16>, vector<128x32xbf16>, vector<8x32xf32> -> vector<8x32xf32>
    %c0_21 = arith.constant 0 : index
    %c0_22 = arith.constant 0 : index
    %42 = vector.load %arg7[%c0_21, %c0_22] : memref<1x32xf32, #tpu.memory_space<vmem>>, vector<1x32xf32>
    %43 = vector.broadcast %42 : vector<1x32xf32> to vector<8x32xf32>
    %44 = arith.addf %41, %43 : vector<8x32xf32>
    %45 = tpu.iota {dimensions = array<i32: 1>} : vector<8x32xi32>
    %c16_i32 = arith.constant 16 : i32
    %46 = vector.broadcast %c16_i32 : i32 to vector<8x32xi32>
    %47 = arith.cmpi slt, %45, %46 : vector<8x32xi32>
    %48 = math.exp %44 : vector<8x32xf32>
    %49 = arith.select %47, %44, %48 : vector<8x32xi1>, vector<8x32xf32>
    %c0_23 = arith.constant 0 : index
    %c0_24 = arith.constant 0 : index
    %50 = vector.load %arg8[%c0_23, %c0_24] : memref<8x32xf32, #tpu.memory_space<vmem>>, vector<8x32xf32>
    tpu.vector_store %arg8[%c0_23, %c0_24], %49 {strides = array<i32>} : memref<8x32xf32, #tpu.memory_space<vmem>>, vector<8x32xf32>,
    return
  }
  func.func @transform_0(%arg0: i32) -> (i32, i32) {
    %c0_i32 = arith.constant 0 : i32
    %c0_i32_0 = arith.constant 0 : i32
    return %arg0, %c0_i32 : i32, i32
  }
  func.func @transform_1(%arg0: i32) -> (i32, i32) {
    %c0_i32 = arith.constant 0 : i32
    %c0_i32_0 = arith.constant 0 : i32
    %c0_i32_1 = arith.constant 0 : i32
    return %c0_i32, %c0_i32_0 : i32, i32
  }
  func.func @transform_2(%arg0: i32) -> (i32, i32) {
    %c0_i32 = arith.constant 0 : i32
    %c0_i32_0 = arith.constant 0 : i32
    %c0_i32_1 = arith.constant 0 : i32
    return %c0_i32, %c0_i32_0 : i32, i32
  }
  func.func @transform_3(%arg0: i32) -> (i32, i32) {
    %c0_i32 = arith.constant 0 : i32
    %c0_i32_0 = arith.constant 0 : i32
    %c0_i32_1 = arith.constant 0 : i32
    return %c0_i32, %c0_i32_0 : i32, i32
  }
  func.func @transform_4(%arg0: i32) -> (i32, i32) {
    %c0_i32 = arith.constant 0 : i32
    %c0_i32_0 = arith.constant 0 : i32
    %c0_i32_1 = arith.constant 0 : i32
    return %c0_i32, %c0_i32_0 : i32, i32
  }
  func.func @transform_5(%arg0: i32) -> (i32, i32) {
    %c0_i32 = arith.constant 0 : i32
    %c0_i32_0 = arith.constant 0 : i32
    %c0_i32_1 = arith.constant 0 : i32
    return %c0_i32, %c0_i32_0 : i32, i32
  }
  func.func @transform_6(%arg0: i32) -> (i32, i32) {
    %c0_i32 = arith.constant 0 : i32
    %c0_i32_0 = arith.constant 0 : i32
    %c0_i32_1 = arith.constant 0 : i32
    return %c0_i32, %c0_i32_0 : i32, i32
  }
  func.func @transform_7(%arg0: i32) -> (i32, i32) {
    %c0_i32 = arith.constant 0 : i32
    %c0_i32_0 = arith.constant 0 : i32
    return %arg0, %c0_i32 : i32, i32
  }
}

</mosaic_0001>

<bundles_post_ra>
// kernel: tpu_custom_call.1
= control target key start
LH: loop header
LB: loop body
LE: loop exit
PB: predicated region body
PF: predicated region fallthrough
CT: control target
= control target key end

     0   :  { %12 = vsyncpa [#allocation3], 0  ;;  %s3529_s0 = inlined_call_operand.vmem [shape: f32[8,1024], index: 0, kind: input, shape index: {}]   ;;  %s3530_s1 = inlined_call_operand.hbm [shape: bf16[1024,512], index: 1, kind: input, shape index: {}]   ;;  %s3531_s2 = inlined_call_operand.vmem [shape: f32[1,512], index: 2, kind: input, shape index: {}]   ;;  %s3532_s3 = inlined_call_operand.hbm [shape: bf16[512,128], index: 3, kind: input, shape index: {}]   ;;  %s3533_s4 = inlined_call_operand.vmem [shape: f32[1,128], index: 4, kind: input, shape index: {}]   ;;  %s3534_s5 = inlined_call_operand.vmem [shape: bf16[128,32], index: 5, kind: input, shape index: {}]   ;;  %s3535_s6 = inlined_call_operand.vmem [shape: f32[1,32], index: 6, kind: input, shape index: {}]   ;;  %s3536_s7 = inlined_call_operand.hbm [shape: f32[8,32], index: 7, kind: output, shape index: {}]  }
   0x1   :  { %13 = vsyncpa [#allocation6], 0 }
   0x2   :  { %14 = vsyncpa [#allocation4], 0  ;;  %s3368_s24 = smov [#allocation2]  }
   0x3   :  { %s22_s25 = sshll.u32 %s3368_s24, 4  ;;  %s23_s25 = int_to_ptr.vmem [resolvable:$true] %s22_s25 }
   0x4   :  { %s3310_s26 = scalar_lea.vmem %s23_s25, 32768  ;;  %p3315_p1 = scmp.lt.s32.totalorder %s23_s25, %s23_s25 }
   0x5   :  { %p3311_p0 = scmp.ne.s32.totalorder %s23_s25, %s3310_s26  ;;  %p3316_p2 = scmp.lt.s32.totalorder %s3310_s26, %s3310_s26 }
   0x7   :  { %p3317_p3 = por %p3316_p2, %p3315_p1 }
   0x9   :  { %p3318_p4 = pnand %p3317_p3, %p3311_p0 }
   0xb   :  { %3321 = shalt.err (!%p3318_p4)
}
   0xc   :  { %s3369_s27 = smov 256   ;;  %s3370_s28 = smov 16  }
   0xd   :  { %28 = dma.hbm_to_vmem [thread:$0]  %s3530_s1, 32768, %s23_s25, [#allocation3], %s3369_s27, %s3369_s27, %s3370_s28  }
   0xe   :  { %s3371_s8 = smov [#allocation5]  }
   0xf   :  { %s36_s9 = sshll.u32 %s3371_s8, 4  ;;  %s37_s9 = int_to_ptr.vmem [resolvable:$true] %s36_s9 }
  0x10   :  { %s3330_s10 = scalar_lea.vmem %s37_s9, 4096  ;;  %p3335_p6 = scmp.lt.s32.totalorder %s37_s9, %s37_s9 }
  0x11   :  { %p3331_p5 = scmp.ne.s32.totalorder %s37_s9, %s3330_s10  ;;  %p3336_p7 = scmp.lt.s32.totalorder %s3330_s10, %s3330_s10 }
  0x13   :  { %p3337_p8 = por %p3336_p7, %p3335_p6 }
  0x15   :  { %p3338_p9 = pnand %p3337_p8, %p3331_p5 }
  0x17   :  { %3341 = shalt.err (!%p3338_p9)
}
  0x18   :  { %s3372_s11 = smov 64   ;;  %s3373_s12 = smov 4  }
  0x19   :  { %42 = dma.hbm_to_vmem [thread:$0]  %s3532_s3, 4096, %s37_s9, [#allocation6], %s3372_s11, %s3372_s11, %s3373_s12  }
  0x1a   :  { %3362 = dma.done.wait [#allocation3], 32768  }
  0x1b   :  { %3363 = vsyncadd [#allocation3], 4294934528 }
  0x1c   :  { %3364 = dma.done.wait [#allocation6], 4096  }
  0x1d   :  { %3365 = vsyncadd [#allocation6], 4294963200  ;;  %v2866_v0 = vld [vmem:[#allocation2 + $0xe4] ss:$16 sps:$4 sm:$0xff]   ;;  %v2870_v2 = vld [vmem:[#allocation2 + $0xe0] ss:$16 sps:$4 sm:$0xff]  }
  0x1e   :  { %v2868_v1 = vld [vmem:[#allocation2 + $0x2e4] ss:$16 sps:$4 sm:$0xff]   ;;  %1630 = vmatprep.subr.bf16.mxu0 %v2866_v0  ;;  %v2871_v3 = vld [vmem:[#allocation2 + $0x2e0] ss:$16 sps:$4 sm:$0xff]   ;;  %v57_v46 = vld [vmem:[%s3529_s0 + $0x8] sm:$0xff]  ;;  %vm3375_vm0 = vmmov 0  }
  0x1f   :  { %1671 = vmatprep.subr.bf16.mxu1 %v2868_v1  ;;  %v2872_v4 = vld [vmem:[#allocation2 + $0xc4] ss:$16 sps:$4 sm:$0xff]   ;;  %1631 = vmatpush1.bf16.msra.mxu0 %v2870_v2  ;;  %v2876_v6 = vld [vmem:[#allocation2 + $0xc0] ss:$16 sps:$4 sm:$0xff]   ;;  %v3426_v49 = vpack.c.bf16 %v57_v46, %v57_v46  ;;  %v59_v50 = vld [vmem:[%s3529_s0 + $0x18] sm:$0xff]  ;;  %s3376_s22 = smov [#allocation7]  }
  0x20   :  { %1672 = vmatpush1.bf16.msra.mxu1 %v2871_v3  ;;  %v2874_v5 = vld [vmem:[#allocation2 + $0x2c4] ss:$16 sps:$4 sm:$0xff]   ;;  %1632 = vmatprep.subr.bf16.mxu0 %v2872_v4  ;;  %v2877_v7 = vld [vmem:[#allocation2 + $0x2c0] ss:$16 sps:$4 sm:$0xff]   ;;  %v3431_v52 = vpack.c.bf16 %v59_v50, %v59_v50  ;;  %s2476_s23 = sshll.u32 %s3376_s22, 4  ;;  %vm2468_vm2 = vcmask 261120   ;;  %s2477_s23 = int_to_ptr.vmem [resolvable:$true] %s2476_s23 }
  0x21   :  { %1673 = vmatprep.subr.bf16.mxu1 %v2874_v5  ;;  %v2878_v8 = vld [vmem:[#allocation2 + $0xa4] ss:$16 sps:$4 sm:$0xff]   ;;  %v2882_v10 = vld [vmem:[#allocation2 + $0xa0] ss:$16 sps:$4 sm:$0xff]   ;;  %1662 = vmatprep.mubr.bf16.mxu0 %v3426_v49  ;;  %s3342_s24 = scalar_lea.vmem %s2477_s23, 128  ;;  %p3347_p11 = scmp.lt.s32.totalorder %s2477_s23, %s2477_s23 }
  0x22   :  { %v2880_v9 = vld [vmem:[#allocation2 + $0x2a4] ss:$16 sps:$4 sm:$0xff]   ;;  %v2883_v11 = vld [vmem:[#allocation2 + $0x2a0] ss:$16 sps:$4 sm:$0xff]   ;;  %1703 = vmatprep.mubr.bf16.mxu1 %v3431_v52  ;;  %p3343_p10 = scmp.ne.s32.totalorder %s2477_s23, %s3342_s24  ;;  %p3348_p12 = scmp.lt.s32.totalorder %s3342_s24, %s3342_s24 }
  0x23   :  { %1633 = vmatpush1.bf16.msra.mxu0 %v2876_v6  ;;  %v2884_v12 = vld [vmem:[#allocation2 + $0x84] ss:$16 sps:$4 sm:$0xff]   ;;  %v2888_v14 = vld [vmem:[#allocation2 + $0x80] ss:$16 sps:$4 sm:$0xff]  }
  0x24   :  { %1674 = vmatpush1.bf16.msra.mxu1 %v2877_v7  ;;  %1634 = vmatprep.subr.bf16.mxu0 %v2878_v8  ;;  %v2886_v13 = vld [vmem:[#allocation2 + $0x284] ss:$16 sps:$4 sm:$0xff]   ;;  %v2889_v15 = vld [vmem:[#allocation2 + $0x280] ss:$16 sps:$4 sm:$0xff]   ;;  %p3349_p13 = por %p3348_p12, %p3347_p11 }
  0x25   :  { %1675 = vmatprep.subr.bf16.mxu1 %v2880_v9  ;;  %v2890_v16 = vld [vmem:[#allocation2 + $0x64] ss:$16 sps:$4 sm:$0xff]   ;;  %v2894_v18 = vld [vmem:[#allocation2 + $0x60] ss:$16 sps:$4 sm:$0xff]  }
  0x26   :  { %v2892_v17 = vld [vmem:[#allocation2 + $0x264] ss:$16 sps:$4 sm:$0xff]   ;;  %v2895_v19 = vld [vmem:[#allocation2 + $0x260] ss:$16 sps:$4 sm:$0xff]   ;;  %p3350_p0 = pnand %p3349_p13, %p3343_p10 }
  0x27   :  { %1635 = vmatpush1.bf16.msra.mxu0 %v2882_v10  ;;  %v2896_v20 = vld [vmem:[#allocation2 + $0x44] ss:$16 sps:$4 sm:$0xff]   ;;  %v2900_v22 = vld [vmem:[#allocation2 + $0x40] ss:$16 sps:$4 sm:$0xff]  }
  0x28   :  { %1676 = vmatpush1.bf16.msra.mxu1 %v2883_v11  ;;  %1636 = vmatprep.subr.bf16.mxu0 %v2884_v12  ;;  %v2898_v21 = vld [vmem:[#allocation2 + $0x244] ss:$16 sps:$4 sm:$0xff]   ;;  %v2901_v23 = vld [vmem:[#allocation2 + $0x240] ss:$16 sps:$4 sm:$0xff]  }
  0x29   :  { %1677 = vmatprep.subr.bf16.mxu1 %v2886_v13  ;;  %v2902_v24 = vld [vmem:[#allocation2 + $0x24] ss:$16 sps:$4 sm:$0xff]   ;;  %v2906_v26 = vld [vmem:[#allocation2 + $0x20] ss:$16 sps:$4 sm:$0xff]  }
  0x2a   :  { %v2904_v25 = vld [vmem:[#allocation2 + $0x224] ss:$16 sps:$4 sm:$0xff]   ;;  %v2907_v27 = vld [vmem:[#allocation2 + $0x220] ss:$16 sps:$4 sm:$0xff]  }
  0x2b   :  { %1637 = vmatpush1.bf16.msra.mxu0 %v2888_v14  ;;  %v2908_v28 = vld [vmem:[#allocation2 + $0x4] ss:$16 sps:$4 sm:$0xff]   ;;  %v2912_v30 = vld [vmem:[#allocation2] ss:$16 sps:$4 sm:$0xff]  }
  0x2c   :  { %1678 = vmatpush1.bf16.msra.mxu1 %v2889_v15  ;;  %1638 = vmatprep.subr.bf16.mxu0 %v2890_v16  ;;  %v2910_v29 = vld [vmem:[#allocation2 + $0x204] ss:$16 sps:$4 sm:$0xff]   ;;  %v2913_v31 = vld [vmem:[#allocation2 + $0x200] ss:$16 sps:$4 sm:$0xff]  }
  0x2d   :  { %1679 = vmatprep.subr.bf16.mxu1 %v2892_v17  ;;  %v2914_v32 = vld [vmem:[#allocation2 + $0x1e4] ss:$16 sps:$4 sm:$0xff]   ;;  %v2918_v34 = vld [vmem:[#allocation2 + $0x1e0] ss:$16 sps:$4 sm:$0xff]  }
  0x2e   :  { %v2916_v33 = vld [vmem:[#allocation2 + $0x3e4] ss:$16 sps:$4 sm:$0xff]   ;;  %v2919_v35 = vld [vmem:[#allocation2 + $0x3e0] ss:$16 sps:$4 sm:$0xff]  }
  0x2f   :  { %1639 = vmatpush1.bf16.msra.mxu0 %v2894_v18  ;;  %v2920_v36 = vld [vmem:[#allocation2 + $0x1c4] ss:$16 sps:$4 sm:$0xff]   ;;  %v2924_v38 = vld [vmem:[#allocation2 + $0x1c0] ss:$16 sps:$4 sm:$0xff]  }
  0x30   :  { %1680 = vmatpush1.bf16.msra.mxu1 %v2895_v19  ;;  %1640 = vmatprep.subr.bf16.mxu0 %v2896_v20  ;;  %v2922_v37 = vld [vmem:[#allocation2 + $0x3c4] ss:$16 sps:$4 sm:$0xff]   ;;  %v2925_v39 = vld [vmem:[#allocation2 + $0x3c0] ss:$16 sps:$4 sm:$0xff]  }
  0x31   :  { %1681 = vmatprep.subr.bf16.mxu1 %v2898_v21  ;;  %v2926_v40 = vld [vmem:[#allocation2 + $0x1a4] ss:$16 sps:$4 sm:$0xff]   ;;  %v2930_v42 = vld [vmem:[#allocation2 + $0x1a0] ss:$16 sps:$4 sm:$0xff]  }
  0x32   :  { %v2928_v41 = vld [vmem:[#allocation2 + $0x3a4] ss:$16 sps:$4 sm:$0xff]   ;;  %v2931_v43 = vld [vmem:[#allocation2 + $0x3a0] ss:$16 sps:$4 sm:$0xff]  }
  0x33   :  { %1641 = vmatpush1.bf16.msra.mxu0 %v2900_v22  ;;  %v2932_v44 = vld [vmem:[#allocation2 + $0x184] ss:$16 sps:$4 sm:$0xff]   ;;  %v2936_v47 = vld [vmem:[#allocation2 + $0x180] ss:$16 sps:$4 sm:$0xff]  }
  0x34   :  { %1682 = vmatpush1.bf16.msra.mxu1 %v2901_v23  ;;  %1642 = vmatprep.subr.bf16.mxu0 %v2902_v24  ;;  %v2934_v45 = vld [vmem:[#allocation2 + $0x384] ss:$16 sps:$4 sm:$0xff]   ;;  %v2937_v48 = vld [vmem:[#allocation2 + $0x380] ss:$16 sps:$4 sm:$0xff]  }
  0x35   :  { %1683 = vmatprep.subr.bf16.mxu1 %v2904_v25  ;;  %v2938_v51 = vld [vmem:[#allocation2 + $0x164] ss:$16 sps:$4 sm:$0xff]   ;;  %v2942_v54 = vld [vmem:[#allocation2 + $0x160] ss:$16 sps:$4 sm:$0xff]  }
  0x36   :  { %v2940_v53 = vld [vmem:[#allocation2 + $0x364] ss:$16 sps:$4 sm:$0xff]   ;;  %v2943_v55 = vld [vmem:[#allocation2 + $0x360] ss:$16 sps:$4 sm:$0xff]  }
  0x37   :  { %1643 = vmatpush1.bf16.msra.mxu0 %v2906_v26  ;;  %v2944_v56 = vld [vmem:[#allocation2 + $0x144] ss:$16 sps:$4 sm:$0xff]   ;;  %v2948_v58 = vld [vmem:[#allocation2 + $0x140] ss:$16 sps:$4 sm:$0xff]  }
  0x38   :  { %1684 = vmatpush1.bf16.msra.mxu1 %v2907_v27  ;;  %1644 = vmatprep.subr.bf16.mxu0 %v2908_v28  ;;  %v2946_v57 = vld [vmem:[#allocation2 + $0x344] ss:$16 sps:$4 sm:$0xff]   ;;  %v2949_v59 = vld [vmem:[#allocation2 + $0x340] ss:$16 sps:$4 sm:$0xff]  }
  0x39   :  { %1685 = vmatprep.subr.bf16.mxu1 %v2910_v29  ;;  %v2950_v60 = vld [vmem:[#allocation2 + $0x124] ss:$16 sps:$4 sm:$0xff]   ;;  %v2954_v62 = vld [vmem:[#allocation2 + $0x120] ss:$16 sps:$4 sm:$0xff]  }
  0x3a   :  { %v2952_v61 = vld [vmem:[#allocation2 + $0x324] ss:$16 sps:$4 sm:$0xff]   ;;  %v2955_v63 = vld [vmem:[#allocation2 + $0x320] ss:$16 sps:$4 sm:$0xff]  }
  0x3b   :  { %1645 = vmatpush1.bf16.msra.mxu0 %v2912_v30  ;;  %v2956_v0 = vld [vmem:[#allocation2 + $0x104] ss:$16 sps:$4 sm:$0xff]   ;;  %v2960_v2 = vld [vmem:[#allocation2 + $0x100] ss:$16 sps:$4 sm:$0xff]  }
  0x3c   :  { %1686 = vmatpush1.bf16.msra.mxu1 %v2913_v31  ;;  %1646 = vmatprep.subr.bf16.mxu0 %v2914_v32  ;;  %v2958_v1 = vld [vmem:[#allocation2 + $0x304] ss:$16 sps:$4 sm:$0xff]   ;;  %v2961_v3 = vld [vmem:[#allocation2 + $0x300] ss:$16 sps:$4 sm:$0xff]  }
  0x3d   :  { %1687 = vmatprep.subr.bf16.mxu1 %v2916_v33  ;;  %v56_v4 = vld [vmem:[%s3529_s0] sm:$0xff]  ;;  %v58_v5 = vld [vmem:[%s3529_s0 + $0x10] sm:$0xff] }
  0x3e   :  { %v2964_v6 = vld [vmem:[#allocation2 + $0x4e4] ss:$16 sps:$4 sm:$0xff]   ;;  %v3441_v8 = vpack.c.bf16 %v56_v4, %v56_v4  ;;  %v3443_v9 = vpack.c.bf16 %v58_v5, %v58_v5  ;;  %v2962_v10 = vld [vmem:[#allocation2 + $0x4e0] ss:$16 sps:$4 sm:$0xff]  }
  0x3f   :  { %1647 = vmatpush2.bf16.msra.mxu0 %v2918_v34  ;;  %v2967_v7 = vld [vmem:[#allocation2 + $0x6e4] ss:$16 sps:$4 sm:$0xff]   ;;  %v2965_v11 = vld [vmem:[#allocation2 + $0x6e0] ss:$16 sps:$4 sm:$0xff]   ;;  %v61_v34 = vld [vmem:[%s3529_s0 + $0x28] sm:$0xff] }
  0x40   :  { %1688 = vmatpush2.bf16.msra.mxu1 %v2919_v35  ;;  %1648 = vmatprep.subr.bf16.mxu0 %v2920_v36  ;;  %v2970_v12 = vld [vmem:[#allocation2 + $0x4c4] ss:$16 sps:$4 sm:$0xff]   ;;  %v2968_v14 = vld [vmem:[#allocation2 + $0x4c0] ss:$16 sps:$4 sm:$0xff]  }
  0x41   :  { %1689 = vmatprep.subr.bf16.mxu1 %v2922_v37  ;;  %v2973_v13 = vld [vmem:[#allocation2 + $0x6c4] ss:$16 sps:$4 sm:$0xff]   ;;  %v2971_v15 = vld [vmem:[#allocation2 + $0x6c0] ss:$16 sps:$4 sm:$0xff]   ;;  %v3450_v37 = vpack.c.bf16 %v61_v34, %v61_v34  ;;  %v3076_v34 = vld [vmem:[#allocation2 + $0x88] ss:$16 sps:$4 sm:$0xff]  }
  0x42   :  { %v2976_v16 = vld [vmem:[#allocation2 + $0x4a4] ss:$16 sps:$4 sm:$0xff]   ;;  %v2974_v18 = vld [vmem:[#allocation2 + $0x4a0] ss:$16 sps:$4 sm:$0xff]  }
  0x43   :  { %1649 = vmatpush2.bf16.msra.mxu0 %v2924_v38  ;;  %v2979_v17 = vld [vmem:[#allocation2 + $0x6a4] ss:$16 sps:$4 sm:$0xff]   ;;  %v2977_v19 = vld [vmem:[#allocation2 + $0x6a0] ss:$16 sps:$4 sm:$0xff]   ;;  %v63_v38 = vld [vmem:[%s3529_s0 + $0x38] sm:$0xff] }
  0x44   :  { %1690 = vmatpush2.bf16.msra.mxu1 %v2925_v39  ;;  %1650 = vmatprep.subr.bf16.mxu0 %v2926_v40  ;;  %v2982_v20 = vld [vmem:[#allocation2 + $0x484] ss:$16 sps:$4 sm:$0xff]   ;;  %v2980_v22 = vld [vmem:[#allocation2 + $0x480] ss:$16 sps:$4 sm:$0xff]   ;;  %v3455_v40 = vpack.c.bf16 %v63_v38, %v63_v38  ;;  %v3087_v38 = vld [vmem:[#allocation2 + $0x26c] ss:$16 sps:$4 sm:$0xff]  }
  0x45   :  { %1691 = vmatprep.subr.bf16.mxu1 %v2928_v41  ;;  %v2985_v21 = vld [vmem:[#allocation2 + $0x684] ss:$16 sps:$4 sm:$0xff]   ;;  %v2983_v23 = vld [vmem:[#allocation2 + $0x680] ss:$16 sps:$4 sm:$0xff]  }
  0x46   :  { %v2988_v24 = vld [vmem:[#allocation2 + $0x464] ss:$16 sps:$4 sm:$0xff]   ;;  %v2986_v26 = vld [vmem:[#allocation2 + $0x460] ss:$16 sps:$4 sm:$0xff]  }
  0x47   :  { %1651 = vmatpush2.bf16.msra.mxu0 %v2930_v42  ;;  %v2991_v25 = vld [vmem:[#allocation2 + $0x664] ss:$16 sps:$4 sm:$0xff]   ;;  %v2989_v27 = vld [vmem:[#allocation2 + $0x660] ss:$16 sps:$4 sm:$0xff]  }
  0x48   :  { %1692 = vmatpush2.bf16.msra.mxu1 %v2931_v43  ;;  %1652 = vmatprep.subr.bf16.mxu0 %v2932_v44  ;;  %v2994_v28 = vld [vmem:[#allocation2 + $0x444] ss:$16 sps:$4 sm:$0xff]   ;;  %v2992_v30 = vld [vmem:[#allocation2 + $0x440] ss:$16 sps:$4 sm:$0xff]  }
  0x49   :  { %1693 = vmatprep.subr.bf16.mxu1 %v2934_v45  ;;  %v2997_v29 = vld [vmem:[#allocation2 + $0x644] ss:$16 sps:$4 sm:$0xff]   ;;  %v2995_v31 = vld [vmem:[#allocation2 + $0x640] ss:$16 sps:$4 sm:$0xff]  }
  0x4a   :  { %v3000_v32 = vld [vmem:[#allocation2 + $0x424] ss:$16 sps:$4 sm:$0xff]   ;;  %v2998_v35 = vld [vmem:[#allocation2 + $0x420] ss:$16 sps:$4 sm:$0xff]  }
  0x4b   :  { %1653 = vmatpush2.bf16.msra.mxu0 %v2936_v47  ;;  %v3003_v33 = vld [vmem:[#allocation2 + $0x624] ss:$16 sps:$4 sm:$0xff]   ;;  %v3001_v36 = vld [vmem:[#allocation2 + $0x620] ss:$16 sps:$4 sm:$0xff]  }
  0x4c   :  { %1694 = vmatpush2.bf16.msra.mxu1 %v2937_v48  ;;  %1654 = vmatprep.subr.bf16.mxu0 %v2938_v51  ;;  %v3006_v39 = vld [vmem:[#allocation2 + $0x404] ss:$16 sps:$4 sm:$0xff]   ;;  %v3004_v42 = vld [vmem:[#allocation2 + $0x400] ss:$16 sps:$4 sm:$0xff]  }
  0x4d   :  { %1695 = vmatprep.subr.bf16.mxu1 %v2940_v53  ;;  %v3009_v41 = vld [vmem:[#allocation2 + $0x604] ss:$16 sps:$4 sm:$0xff]   ;;  %v3007_v43 = vld [vmem:[#allocation2 + $0x600] ss:$16 sps:$4 sm:$0xff]  }
  0x4e   :  { %v3012_v44 = vld [vmem:[#allocation2 + $0x5e4] ss:$16 sps:$4 sm:$0xff]   ;;  %v3010_v46 = vld [vmem:[#allocation2 + $0x5e0] ss:$16 sps:$4 sm:$0xff]  }
  0x4f   :  { %1655 = vmatpush2.bf16.msra.mxu0 %v2942_v54  ;;  %v3015_v45 = vld [vmem:[#allocation2 + $0x7e4] ss:$16 sps:$4 sm:$0xff]   ;;  %v3013_v47 = vld [vmem:[#allocation2 + $0x7e0] ss:$16 sps:$4 sm:$0xff]  }
  0x50   :  { %1696 = vmatpush2.bf16.msra.mxu1 %v2943_v55  ;;  %1656 = vmatprep.subr.bf16.mxu0 %v2944_v56  ;;  %v3018_v48 = vld [vmem:[#allocation2 + $0x5c4] ss:$16 sps:$4 sm:$0xff]   ;;  %v3016_v51 = vld [vmem:[#allocation2 + $0x5c0] ss:$16 sps:$4 sm:$0xff]  }
  0x51   :  { %1697 = vmatprep.subr.bf16.mxu1 %v2946_v57  ;;  %v3021_v50 = vld [vmem:[#allocation2 + $0x7c4] ss:$16 sps:$4 sm:$0xff]   ;;  %v3019_v53 = vld [vmem:[#allocation2 + $0x7c0] ss:$16 sps:$4 sm:$0xff]  }
  0x52   :  { %v3024_v54 = vld [vmem:[#allocation2 + $0x5a4] ss:$16 sps:$4 sm:$0xff]   ;;  %v3022_v56 = vld [vmem:[#allocation2 + $0x5a0] ss:$16 sps:$4 sm:$0xff]  }
  0x53   :  { %1657 = vmatpush2.bf16.msra.mxu0 %v2948_v58  ;;  %v3027_v55 = vld [vmem:[#allocation2 + $0x7a4] ss:$16 sps:$4 sm:$0xff]   ;;  %v3025_v57 = vld [vmem:[#allocation2 + $0x7a0] ss:$16 sps:$4 sm:$0xff]  }
  0x54   :  { %1698 = vmatpush2.bf16.msra.mxu1 %v2949_v59  ;;  %1658 = vmatprep.subr.bf16.mxu0 %v2950_v60  ;;  %v3030_v58 = vld [vmem:[#allocation2 + $0x584] ss:$16 sps:$4 sm:$0xff]   ;;  %v3028_v60 = vld [vmem:[#allocation2 + $0x580] ss:$16 sps:$4 sm:$0xff]  }
  0x55   :  { %1699 = vmatprep.subr.bf16.mxu1 %v2952_v61  ;;  %v3033_v59 = vld [vmem:[#allocation2 + $0x784] ss:$16 sps:$4 sm:$0xff]   ;;  %v3031_v61 = vld [vmem:[#allocation2 + $0x780] ss:$16 sps:$4 sm:$0xff]  }
  0x56   :  { %v3040_v4 = vld [vmem:[#allocation2 + $0x540] ss:$16 sps:$4 sm:$0xff]  }
  0x57   :  { %1659 = vmatpush2.bf16.msra.mxu0 %v2954_v62  ;;  %v3036_v62 = vld [vmem:[#allocation2 + $0x564] ss:$16 sps:$4 sm:$0xff]   ;;  %v3043_v5 = vld [vmem:[#allocation2 + $0x740] ss:$16 sps:$4 sm:$0xff]  }
  0x58   :  { %1700 = vmatpush2.bf16.msra.mxu1 %v2955_v63  ;;  %1660 = vmatprep.subr.bf16.mxu0 %v2956_v0  ;;  %v3039_v63 = vld [vmem:[#allocation2 + $0x764] ss:$16 sps:$4 sm:$0xff]   ;;  %v3034_v0 = vld [vmem:[#allocation2 + $0x560] ss:$16 sps:$4 sm:$0xff]  }
  0x59   :  { %1701 = vmatprep.subr.bf16.mxu1 %v2958_v1  ;;  %v3037_v1 = vld [vmem:[#allocation2 + $0x760] ss:$16 sps:$4 sm:$0xff]  }
  0x5b   :  { %1661 = vmatpush2.bf16.msra.mxu0 %v2960_v2  ;;  %v3042_v2 = vld [vmem:[#allocation2 + $0x544] ss:$16 sps:$4 sm:$0xff]  }
  0x5c   :  { %1702 = vmatpush2.bf16.msra.mxu1 %v2961_v3  ;;  %1712 = vmatprep.subr.bf16.mxu0 %v2964_v6  ;;  %v3045_v3 = vld [vmem:[#allocation2 + $0x744] ss:$16 sps:$4 sm:$0xff]  }
  0x5d   :  { %1753 = vmatprep.subr.bf16.mxu1 %v2967_v7  ;;  %v3048_v6 = vld [vmem:[#allocation2 + $0x524] ss:$16 sps:$4 sm:$0xff]  }
  0x5e   :  { %1663 = vmatmul.mubr.bf16.vlgmr.msra.gmra.mxu0 %v3441_v8  ;;  %v3051_v7 = vld [vmem:[#allocation2 + $0x724] ss:$16 sps:$4 sm:$0xff]  }
  0x5f   :  { %1704 = vmatmul.mubr.bf16.vlgmr.msra.gmra.mxu1 %v3443_v9  ;;  %1713 = vmatpush1.bf16.msra.mxu0 %v2962_v10  ;;  %v3046_v10 = vld [vmem:[#allocation2 + $0x520] ss:$16 sps:$4 sm:$0xff]  }
  0x60   :  { %1754 = vmatpush1.bf16.msra.mxu1 %v2965_v11  ;;  %1714 = vmatprep.subr.bf16.mxu0 %v2970_v12  ;;  %v3049_v11 = vld [vmem:[#allocation2 + $0x720] ss:$16 sps:$4 sm:$0xff]   ;;  %v3054_v12 = vld [vmem:[#allocation2 + $0x504] ss:$16 sps:$4 sm:$0xff]  }
  0x61   :  { %1755 = vmatprep.subr.bf16.mxu1 %v2973_v13  ;;  %1744 = vmatprep.mubr.bf16.mxu0 %v3450_v37  ;;  %v3057_v13 = vld [vmem:[#allocation2 + $0x704] ss:$16 sps:$4 sm:$0xff]  }
  0x62   :  { %1785 = vmatprep.mubr.bf16.mxu1 %v3455_v40 }
  0x63   :  { %1715 = vmatpush1.bf16.msra.mxu0 %v2968_v14  ;;  %v3052_v14 = vld [vmem:[#allocation2 + $0x500] ss:$16 sps:$4 sm:$0xff]  }
  0x64   :  { %1756 = vmatpush1.bf16.msra.mxu1 %v2971_v15  ;;  %1716 = vmatprep.subr.bf16.mxu0 %v2976_v16  ;;  %v3055_v15 = vld [vmem:[#allocation2 + $0x700] ss:$16 sps:$4 sm:$0xff]  }
  0x65   :  { %1757 = vmatprep.subr.bf16.mxu1 %v2979_v17  ;;  %v60_v16 = vld [vmem:[%s3529_s0 + $0x20] sm:$0xff]  ;;  %v62_v17 = vld [vmem:[%s3529_s0 + $0x30] sm:$0xff] }
  0x67   :  { %1717 = vmatpush1.bf16.msra.mxu0 %v2974_v18  ;;  %v3060_v18 = vld [vmem:[#allocation2 + $0xec] ss:$16 sps:$4 sm:$0xff]  }
  0x68   :  { %1758 = vmatpush1.bf16.msra.mxu1 %v2977_v19  ;;  %1718 = vmatprep.subr.bf16.mxu0 %v2982_v20  ;;  %v3063_v19 = vld [vmem:[#allocation2 + $0x2ec] ss:$16 sps:$4 sm:$0xff]   ;;  %v3465_v20 = vpack.c.bf16 %v60_v16, %v60_v16 }
  0x69   :  { %1759 = vmatprep.subr.bf16.mxu1 %v2985_v21  ;;  %v3467_v21 = vpack.c.bf16 %v62_v17, %v62_v17  ;;  %v3144_v16 = vld [vmem:[#allocation2 + $0x12c] ss:$16 sps:$4 sm:$0xff]  }
  0x6a   :  { %v3147_v17 = vld [vmem:[#allocation2 + $0x32c] ss:$16 sps:$4 sm:$0xff]  }
  0x6b   :  { %1719 = vmatpush1.bf16.msra.mxu0 %v2980_v22  ;;  %v3058_v22 = vld [vmem:[#allocation2 + $0xe8] ss:$16 sps:$4 sm:$0xff]  }
  0x6c   :  { %1760 = vmatpush1.bf16.msra.mxu1 %v2983_v23  ;;  %1720 = vmatprep.subr.bf16.mxu0 %v2988_v24  ;;  %v3061_v23 = vld [vmem:[#allocation2 + $0x2e8] ss:$16 sps:$4 sm:$0xff]   ;;  %v3066_v24 = vld [vmem:[#allocation2 + $0xcc] ss:$16 sps:$4 sm:$0xff]  }
  0x6d   :  { %1761 = vmatprep.subr.bf16.mxu1 %v2991_v25  ;;  %v3069_v25 = vld [vmem:[#allocation2 + $0x2cc] ss:$16 sps:$4 sm:$0xff]  }
  0x6f   :  { %1721 = vmatpush1.bf16.msra.mxu0 %v2986_v26  ;;  %v3064_v26 = vld [vmem:[#allocation2 + $0xc8] ss:$16 sps:$4 sm:$0xff]  }
  0x70   :  { %1762 = vmatpush1.bf16.msra.mxu1 %v2989_v27  ;;  %1722 = vmatprep.subr.bf16.mxu0 %v2994_v28  ;;  %v3067_v27 = vld [vmem:[#allocation2 + $0x2c8] ss:$16 sps:$4 sm:$0xff]   ;;  %v3072_v28 = vld [vmem:[#allocation2 + $0xac] ss:$16 sps:$4 sm:$0xff]  }
  0x71   :  { %1763 = vmatprep.subr.bf16.mxu1 %v2997_v29  ;;  %v3075_v29 = vld [vmem:[#allocation2 + $0x2ac] ss:$16 sps:$4 sm:$0xff]  }
  0x73   :  { %1723 = vmatpush1.bf16.msra.mxu0 %v2992_v30  ;;  %v3070_v30 = vld [vmem:[#allocation2 + $0xa8] ss:$16 sps:$4 sm:$0xff]  }
  0x74   :  { %1764 = vmatpush1.bf16.msra.mxu1 %v2995_v31  ;;  %1724 = vmatprep.subr.bf16.mxu0 %v3000_v32  ;;  %v3073_v31 = vld [vmem:[#allocation2 + $0x2a8] ss:$16 sps:$4 sm:$0xff]   ;;  %v3078_v32 = vld [vmem:[#allocation2 + $0x8c] ss:$16 sps:$4 sm:$0xff]  }
  0x75   :  { %1765 = vmatprep.subr.bf16.mxu1 %v3003_v33  ;;  %v3081_v33 = vld [vmem:[#allocation2 + $0x28c] ss:$16 sps:$4 sm:$0xff]  }
  0x77   :  { %1725 = vmatpush1.bf16.msra.mxu0 %v2998_v35  ;;  %v3079_v35 = vld [vmem:[#allocation2 + $0x288] ss:$16 sps:$4 sm:$0xff]  }
  0x78   :  { %1766 = vmatpush1.bf16.msra.mxu1 %v3001_v36  ;;  %1726 = vmatprep.subr.bf16.mxu0 %v3006_v39  ;;  %v3084_v36 = vld [vmem:[#allocation2 + $0x6c] ss:$16 sps:$4 sm:$0xff]   ;;  %v3082_v39 = vld [vmem:[#allocation2 + $0x68] ss:$16 sps:$4 sm:$0xff]  }
  0x79   :  { %1767 = vmatprep.subr.bf16.mxu1 %v3009_v41  ;;  %v3093_v41 = vld [vmem:[#allocation2 + $0x24c] ss:$16 sps:$4 sm:$0xff]  }
  0x7b   :  { %1727 = vmatpush1.bf16.msra.mxu0 %v3004_v42  ;;  %v3088_v42 = vld [vmem:[#allocation2 + $0x48] ss:$16 sps:$4 sm:$0xff]  }
  0x7c   :  { %1768 = vmatpush1.bf16.msra.mxu1 %v3007_v43  ;;  %1728 = vmatprep.subr.bf16.mxu0 %v3012_v44  ;;  %v3091_v43 = vld [vmem:[#allocation2 + $0x248] ss:$16 sps:$4 sm:$0xff]   ;;  %v3096_v44 = vld [vmem:[#allocation2 + $0x2c] ss:$16 sps:$4 sm:$0xff]  }
  0x7d   :  { %1769 = vmatprep.subr.bf16.mxu1 %v3015_v45  ;;  %v3099_v45 = vld [vmem:[#allocation2 + $0x22c] ss:$16 sps:$4 sm:$0xff]  }
  0x7f   :  { %1729 = vmatpush2.bf16.msra.mxu0 %v3010_v46  ;;  %v3094_v46 = vld [vmem:[#allocation2 + $0x28] ss:$16 sps:$4 sm:$0xff]  }
  0x80   :  { %1770 = vmatpush2.bf16.msra.mxu1 %v3013_v47  ;;  %1730 = vmatprep.subr.bf16.mxu0 %v3018_v48  ;;  %v3097_v47 = vld [vmem:[#allocation2 + $0x228] ss:$16 sps:$4 sm:$0xff]   ;;  %v3102_v48 = vld [vmem:[#allocation2 + $0xc] ss:$16 sps:$4 sm:$0xff]  }
  0x81   :  { %1771 = vmatprep.subr.bf16.mxu1 %v3021_v50  ;;  %v3105_v50 = vld [vmem:[#allocation2 + $0x20c] ss:$16 sps:$4 sm:$0xff]  }
  0x83   :  { %1731 = vmatpush2.bf16.msra.mxu0 %v3016_v51  ;;  %v3100_v51 = vld [vmem:[#allocation2 + $0x8] ss:$16 sps:$4 sm:$0xff]  }
  0x84   :  { %1772 = vmatpush2.bf16.msra.mxu1 %v3019_v53  ;;  %1732 = vmatprep.subr.bf16.mxu0 %v3024_v54  ;;  %v3103_v53 = vld [vmem:[#allocation2 + $0x208] ss:$16 sps:$4 sm:$0xff]   ;;  %v3108_v54 = vld [vmem:[#allocation2 + $0x1ec] ss:$16 sps:$4 sm:$0xff]  }
  0x85   :  { %1773 = vmatprep.subr.bf16.mxu1 %v3027_v55  ;;  %v3111_v55 = vld [vmem:[#allocation2 + $0x3ec] ss:$16 sps:$4 sm:$0xff]  }
  0x87   :  { %1733 = vmatpush2.bf16.msra.mxu0 %v3022_v56  ;;  %v3106_v56 = vld [vmem:[#allocation2 + $0x1e8] ss:$16 sps:$4 sm:$0xff]  }
  0x88   :  { %1774 = vmatpush2.bf16.msra.mxu1 %v3025_v57  ;;  %1734 = vmatprep.subr.bf16.mxu0 %v3030_v58  ;;  %v3109_v57 = vld [vmem:[#allocation2 + $0x3e8] ss:$16 sps:$4 sm:$0xff]   ;;  %v3114_v58 = vld [vmem:[#allocation2 + $0x1cc] ss:$16 sps:$4 sm:$0xff]  }
  0x89   :  { %1775 = vmatprep.subr.bf16.mxu1 %v3033_v59  ;;  %v3117_v59 = vld [vmem:[#allocation2 + $0x3cc] ss:$16 sps:$4 sm:$0xff]  }
  0x8b   :  { %1735 = vmatpush2.bf16.msra.mxu0 %v3028_v60  ;;  %v3112_v60 = vld [vmem:[#allocation2 + $0x1c8] ss:$16 sps:$4 sm:$0xff]  }
  0x8c   :  { %1776 = vmatpush2.bf16.msra.mxu1 %v3031_v61  ;;  %1736 = vmatprep.subr.bf16.mxu0 %v3036_v62  ;;  %v3115_v61 = vld [vmem:[#allocation2 + $0x3c8] ss:$16 sps:$4 sm:$0xff]   ;;  %v3120_v62 = vld [vmem:[#allocation2 + $0x1ac] ss:$16 sps:$4 sm:$0xff]  }
  0x8d   :  { %1777 = vmatprep.subr.bf16.mxu1 %v3039_v63  ;;  %v3123_v63 = vld [vmem:[#allocation2 + $0x3ac] ss:$16 sps:$4 sm:$0xff]  }
  0x8f   :  { %1737 = vmatpush2.bf16.msra.mxu0 %v3034_v0  ;;  %v3118_v0 = vld [vmem:[#allocation2 + $0x1a8] ss:$16 sps:$4 sm:$0xff]  }
  0x90   :  { %1778 = vmatpush2.bf16.msra.mxu1 %v3037_v1  ;;  %1738 = vmatprep.subr.bf16.mxu0 %v3042_v2  ;;  %v3121_v1 = vld [vmem:[#allocation2 + $0x3a8] ss:$16 sps:$4 sm:$0xff]   ;;  %v3126_v2 = vld [vmem:[#allocation2 + $0x18c] ss:$16 sps:$4 sm:$0xff]  }
  0x91   :  { %1779 = vmatprep.subr.bf16.mxu1 %v3045_v3  ;;  %v3129_v3 = vld [vmem:[#allocation2 + $0x38c] ss:$16 sps:$4 sm:$0xff]  }
  0x93   :  { %1739 = vmatpush2.bf16.msra.mxu0 %v3040_v4  ;;  %v3124_v4 = vld [vmem:[#allocation2 + $0x188] ss:$16 sps:$4 sm:$0xff]  }
  0x94   :  { %1780 = vmatpush2.bf16.msra.mxu1 %v3043_v5  ;;  %1740 = vmatprep.subr.bf16.mxu0 %v3048_v6  ;;  %v3127_v5 = vld [vmem:[#allocation2 + $0x388] ss:$16 sps:$4 sm:$0xff]   ;;  %v3132_v6 = vld [vmem:[#allocation2 + $0x16c] ss:$16 sps:$4 sm:$0xff]  }
  0x95   :  { %1781 = vmatprep.subr.bf16.mxu1 %v3051_v7  ;;  %v3135_v7 = vld [vmem:[#allocation2 + $0x36c] ss:$16 sps:$4 sm:$0xff]  }
  0x97   :  { %1741 = vmatpush2.bf16.msra.mxu0 %v3046_v10  ;;  %v3130_v10 = vld [vmem:[#allocation2 + $0x168] ss:$16 sps:$4 sm:$0xff]  }
  0x98   :  { %1782 = vmatpush2.bf16.msra.mxu1 %v3049_v11  ;;  %1742 = vmatprep.subr.bf16.mxu0 %v3054_v12  ;;  %v3133_v11 = vld [vmem:[#allocation2 + $0x368] ss:$16 sps:$4 sm:$0xff]   ;;  %v3138_v12 = vld [vmem:[#allocation2 + $0x14c] ss:$16 sps:$4 sm:$0xff]  }
  0x99   :  { %1783 = vmatprep.subr.bf16.mxu1 %v3057_v13  ;;  %v3141_v13 = vld [vmem:[#allocation2 + $0x34c] ss:$16 sps:$4 sm:$0xff]  }
  0x9b   :  { %1743 = vmatpush2.bf16.msra.mxu0 %v3052_v14  ;;  %v3136_v14 = vld [vmem:[#allocation2 + $0x148] ss:$16 sps:$4 sm:$0xff]  }
  0x9c   :  { %1784 = vmatpush2.bf16.msra.mxu1 %v3055_v15  ;;  %1794 = vmatprep.subr.bf16.mxu0 %v3060_v18  ;;  %v3139_v15 = vld [vmem:[#allocation2 + $0x348] ss:$16 sps:$4 sm:$0xff]  }
  0x9d   :  { %1835 = vmatprep.subr.bf16.mxu1 %v3063_v19  ;;  %v3142_v18 = vld [vmem:[#allocation2 + $0x128] ss:$16 sps:$4 sm:$0xff]  }
  0x9e   :  { %1745 = vmatmul.mubr.bf16.vlgmr.msra.gmra.mxu0 %v3465_v20  ;;  %v3145_v19 = vld [vmem:[#allocation2 + $0x328] ss:$16 sps:$4 sm:$0xff]  }
  0x9f   :  { %1786 = vmatmul.mubr.bf16.vlgmr.msra.gmra.mxu1 %v3467_v21  ;;  %1795 = vmatpush1.bf16.msra.mxu0 %v3058_v22  ;;  %v3150_v22 = vld [vmem:[#allocation2 + $0x10c] ss:$16 sps:$4 sm:$0xff]  }
  0xa0   :  { %1836 = vmatpush1.bf16.msra.mxu1 %v3061_v23  ;;  %1796 = vmatprep.subr.bf16.mxu0 %v3066_v24  ;;  %v3153_v23 = vld [vmem:[#allocation2 + $0x30c] ss:$16 sps:$4 sm:$0xff]   ;;  %v3148_v24 = vld [vmem:[#allocation2 + $0x108] ss:$16 sps:$4 sm:$0xff]  }
  0xa1   :  { %1837 = vmatprep.subr.bf16.mxu1 %v3069_v25  ;;  %1826 = vmatprep.mubr.bf16.mxu0 %v3426_v49  ;;  %v3085_v49 = vld [vmem:[#allocation2 + $0x268] ss:$16 sps:$4 sm:$0xff]  }
  0xa2   :  { %1867 = vmatprep.mubr.bf16.mxu1 %v3431_v52  ;;  %v3090_v52 = vld [vmem:[#allocation2 + $0x4c] ss:$16 sps:$4 sm:$0xff]   ;;  %v3151_v25 = vld [vmem:[#allocation2 + $0x308] ss:$16 sps:$4 sm:$0xff]  }
  0xa3   :  { %1797 = vmatpush1.bf16.msra.mxu0 %v3064_v26  ;;  %v3156_v26 = vld [vmem:[#allocation2 + $0x4ec] ss:$16 sps:$4 sm:$0xff]  }
  0xa4   :  { %1838 = vmatpush1.bf16.msra.mxu1 %v3067_v27  ;;  %1798 = vmatprep.subr.bf16.mxu0 %v3072_v28  ;;  %v3159_v27 = vld [vmem:[#allocation2 + $0x6ec] ss:$16 sps:$4 sm:$0xff]   ;;  %v3154_v28 = vld [vmem:[#allocation2 + $0x4e8] ss:$16 sps:$4 sm:$0xff]  }
  0xa5   :  { %1839 = vmatprep.subr.bf16.mxu1 %v3075_v29  ;;  %v3157_v29 = vld [vmem:[#allocation2 + $0x6e8] ss:$16 sps:$4 sm:$0xff]  }
  0xa7   :  { %1799 = vmatpush1.bf16.msra.mxu0 %v3070_v30  ;;  %v3162_v30 = vld [vmem:[#allocation2 + $0x4cc] ss:$16 sps:$4 sm:$0xff]  }
  0xa8   :  { %1840 = vmatpush1.bf16.msra.mxu1 %v3073_v31  ;;  %1800 = vmatprep.subr.bf16.mxu0 %v3078_v32  ;;  %v3165_v31 = vld [vmem:[#allocation2 + $0x6cc] ss:$16 sps:$4 sm:$0xff]   ;;  %v3160_v32 = vld [vmem:[#allocation2 + $0x4c8] ss:$16 sps:$4 sm:$0xff]  }
  0xa9   :  { %1841 = vmatprep.subr.bf16.mxu1 %v3081_v33  ;;  %v3163_v33 = vld [vmem:[#allocation2 + $0x6c8] ss:$16 sps:$4 sm:$0xff]  }
  0xab   :  { %1801 = vmatpush1.bf16.msra.mxu0 %v3076_v34  ;;  %v3168_v34 = vld [vmem:[#allocation2 + $0x4ac] ss:$16 sps:$4 sm:$0xff]  }
  0xac   :  { %1842 = vmatpush1.bf16.msra.mxu1 %v3079_v35  ;;  %1802 = vmatprep.subr.bf16.mxu0 %v3084_v36  ;;  %v3171_v35 = vld [vmem:[#allocation2 + $0x6ac] ss:$16 sps:$4 sm:$0xff]   ;;  %v3166_v36 = vld [vmem:[#allocation2 + $0x4a8] ss:$16 sps:$4 sm:$0xff]  }
  0xad   :  { %1843 = vmatprep.subr.bf16.mxu1 %v3087_v38  ;;  %v3169_v38 = vld [vmem:[#allocation2 + $0x6a8] ss:$16 sps:$4 sm:$0xff]  }
  0xaf   :  { %1803 = vmatpush1.bf16.msra.mxu0 %v3082_v39  ;;  %v3174_v39 = vld [vmem:[#allocation2 + $0x48c] ss:$16 sps:$4 sm:$0xff]  }
  0xb0   :  { %1844 = vmatpush1.bf16.msra.mxu1 %v3085_v49  ;;  %1804 = vmatprep.subr.bf16.mxu0 %v3090_v52  ;;  %v3175_v49 = vld [vmem:[#allocation2 + $0x688] ss:$16 sps:$4 sm:$0xff]   ;;  %v3180_v52 = vld [vmem:[#allocation2 + $0x46c] ss:$16 sps:$4 sm:$0xff]  }
  0xb1   :  { %1845 = vmatprep.subr.bf16.mxu1 %v3093_v41  ;;  %v3183_v41 = vld [vmem:[#allocation2 + $0x66c] ss:$16 sps:$4 sm:$0xff]  }
  0xb3   :  { %1805 = vmatpush1.bf16.msra.mxu0 %v3088_v42  ;;  %v3186_v42 = vld [vmem:[#allocation2 + $0x44c] ss:$16 sps:$4 sm:$0xff]  }
  0xb4   :  { %1846 = vmatpush1.bf16.msra.mxu1 %v3091_v43  ;;  %1806 = vmatprep.subr.bf16.mxu0 %v3096_v44  ;;  %v3189_v43 = vld [vmem:[#allocation2 + $0x64c] ss:$16 sps:$4 sm:$0xff]   ;;  %v3184_v44 = vld [vmem:[#allocation2 + $0x448] ss:$16 sps:$4 sm:$0xff]  }
  0xb5   :  { %1847 = vmatprep.subr.bf16.mxu1 %v3099_v45  ;;  %v3187_v45 = vld [vmem:[#allocation2 + $0x648] ss:$16 sps:$4 sm:$0xff]  }
  0xb7   :  { %1807 = vmatpush1.bf16.msra.mxu0 %v3094_v46  ;;  %v3192_v46 = vld [vmem:[#allocation2 + $0x42c] ss:$16 sps:$4 sm:$0xff]  }
  0xb8   :  { %1848 = vmatpush1.bf16.msra.mxu1 %v3097_v47  ;;  %1808 = vmatprep.subr.bf16.mxu0 %v3102_v48  ;;  %v3195_v47 = vld [vmem:[#allocation2 + $0x62c] ss:$16 sps:$4 sm:$0xff]   ;;  %v3190_v48 = vld [vmem:[#allocation2 + $0x428] ss:$16 sps:$4 sm:$0xff]  }
  0xb9   :  { %1849 = vmatprep.subr.bf16.mxu1 %v3105_v50  ;;  %v3193_v50 = vld [vmem:[#allocation2 + $0x628] ss:$16 sps:$4 sm:$0xff]  }
  0xbb   :  { %1809 = vmatpush1.bf16.msra.mxu0 %v3100_v51  ;;  %v3198_v51 = vld [vmem:[#allocation2 + $0x40c] ss:$16 sps:$4 sm:$0xff]  }
  0xbc   :  { %1850 = vmatpush1.bf16.msra.mxu1 %v3103_v53  ;;  %1810 = vmatprep.subr.bf16.mxu0 %v3108_v54  ;;  %v3201_v53 = vld [vmem:[#allocation2 + $0x60c] ss:$16 sps:$4 sm:$0xff]   ;;  %v3196_v54 = vld [vmem:[#allocation2 + $0x408] ss:$16 sps:$4 sm:$0xff]  }
  0xbd   :  { %1851 = vmatprep.subr.bf16.mxu1 %v3111_v55  ;;  %v3199_v55 = vld [vmem:[#allocation2 + $0x608] ss:$16 sps:$4 sm:$0xff]  }
  0xbf   :  { %1811 = vmatpush2.bf16.msra.mxu0 %v3106_v56  ;;  %v3204_v56 = vld [vmem:[#allocation2 + $0x5ec] ss:$16 sps:$4 sm:$0xff]  }
  0xc0   :  { %1852 = vmatpush2.bf16.msra.mxu1 %v3109_v57  ;;  %1812 = vmatprep.subr.bf16.mxu0 %v3114_v58  ;;  %v3207_v57 = vld [vmem:[#allocation2 + $0x7ec] ss:$16 sps:$4 sm:$0xff]   ;;  %v3202_v58 = vld [vmem:[#allocation2 + $0x5e8] ss:$16 sps:$4 sm:$0xff]  }
  0xc1   :  { %1853 = vmatprep.subr.bf16.mxu1 %v3117_v59  ;;  %v3205_v59 = vld [vmem:[#allocation2 + $0x7e8] ss:$16 sps:$4 sm:$0xff]  }
  0xc3   :  { %1813 = vmatpush2.bf16.msra.mxu0 %v3112_v60  ;;  %v3210_v60 = vld [vmem:[#allocation2 + $0x5cc] ss:$16 sps:$4 sm:$0xff]  }
  0xc4   :  { %1854 = vmatpush2.bf16.msra.mxu1 %v3115_v61  ;;  %1814 = vmatprep.subr.bf16.mxu0 %v3120_v62  ;;  %v3213_v61 = vld [vmem:[#allocation2 + $0x7cc] ss:$16 sps:$4 sm:$0xff]   ;;  %v3208_v62 = vld [vmem:[#allocation2 + $0x5c8] ss:$16 sps:$4 sm:$0xff]  }
  0xc5   :  { %1855 = vmatprep.subr.bf16.mxu1 %v3123_v63  ;;  %v3211_v63 = vld [vmem:[#allocation2 + $0x7c8] ss:$16 sps:$4 sm:$0xff]  }
  0xc7   :  { %1815 = vmatpush2.bf16.msra.mxu0 %v3118_v0  ;;  %v3216_v0 = vld [vmem:[#allocation2 + $0x5ac] ss:$16 sps:$4 sm:$0xff]  }
  0xc8   :  { %1856 = vmatpush2.bf16.msra.mxu1 %v3121_v1  ;;  %1816 = vmatprep.subr.bf16.mxu0 %v3126_v2  ;;  %v3219_v1 = vld [vmem:[#allocation2 + $0x7ac] ss:$16 sps:$4 sm:$0xff]   ;;  %v3214_v2 = vld [vmem:[#allocation2 + $0x5a8] ss:$16 sps:$4 sm:$0xff]  }
  0xc9   :  { %1857 = vmatprep.subr.bf16.mxu1 %v3129_v3  ;;  %v3217_v3 = vld [vmem:[#allocation2 + $0x7a8] ss:$16 sps:$4 sm:$0xff]  }
  0xcb   :  { %1817 = vmatpush2.bf16.msra.mxu0 %v3124_v4  ;;  %v3222_v4 = vld [vmem:[#allocation2 + $0x58c] ss:$16 sps:$4 sm:$0xff]  }
  0xcc   :  { %1858 = vmatpush2.bf16.msra.mxu1 %v3127_v5  ;;  %1818 = vmatprep.subr.bf16.mxu0 %v3132_v6  ;;  %v3225_v5 = vld [vmem:[#allocation2 + $0x78c] ss:$16 sps:$4 sm:$0xff]   ;;  %v3220_v6 = vld [vmem:[#allocation2 + $0x588] ss:$16 sps:$4 sm:$0xff]  }
  0xcd   :  { %1859 = vmatprep.subr.bf16.mxu1 %v3135_v7  ;;  %v3223_v7 = vld [vmem:[#allocation2 + $0x788] ss:$16 sps:$4 sm:$0xff]  }
  0xcf   :  { %1819 = vmatpush2.bf16.msra.mxu0 %v3130_v10  ;;  %v3228_v10 = vld [vmem:[#allocation2 + $0x56c] ss:$16 sps:$4 sm:$0xff]  }
  0xd0   :  { %1860 = vmatpush2.bf16.msra.mxu1 %v3133_v11  ;;  %1820 = vmatprep.subr.bf16.mxu0 %v3138_v12  ;;  %v3231_v11 = vld [vmem:[#allocation2 + $0x76c] ss:$16 sps:$4 sm:$0xff]   ;;  %v3226_v12 = vld [vmem:[#allocation2 + $0x568] ss:$16 sps:$4 sm:$0xff]  }
  0xd1   :  { %1861 = vmatprep.subr.bf16.mxu1 %v3141_v13  ;;  %v3229_v13 = vld [vmem:[#allocation2 + $0x768] ss:$16 sps:$4 sm:$0xff]  }
  0xd3   :  { %1821 = vmatpush2.bf16.msra.mxu0 %v3136_v14  ;;  %v3234_v14 = vld [vmem:[#allocation2 + $0x54c] ss:$16 sps:$4 sm:$0xff]  }
  0xd4   :  { %1862 = vmatpush2.bf16.msra.mxu1 %v3139_v15  ;;  %1822 = vmatprep.subr.bf16.mxu0 %v3144_v16  ;;  %v3237_v15 = vld [vmem:[#allocation2 + $0x74c] ss:$16 sps:$4 sm:$0xff]   ;;  %v3232_v16 = vld [vmem:[#allocation2 + $0x548] ss:$16 sps:$4 sm:$0xff]  }
  0xd5   :  { %1863 = vmatprep.subr.bf16.mxu1 %v3147_v17  ;;  %v3235_v17 = vld [vmem:[#allocation2 + $0x748] ss:$16 sps:$4 sm:$0xff]  }
  0xd7   :  { %1823 = vmatpush2.bf16.msra.mxu0 %v3142_v18  ;;  %v3240_v18 = vld [vmem:[#allocation2 + $0x52c] ss:$16 sps:$4 sm:$0xff]  }
  0xd8   :  { %1864 = vmatpush2.bf16.msra.mxu1 %v3145_v19  ;;  %1824 = vmatprep.subr.bf16.mxu0 %v3150_v22  ;;  %v3243_v19 = vld [vmem:[#allocation2 + $0x72c] ss:$16 sps:$4 sm:$0xff]   ;;  %v3238_v22 = vld [vmem:[#allocation2 + $0x528] ss:$16 sps:$4 sm:$0xff]  }
  0xd9   :  { %1865 = vmatprep.subr.bf16.mxu1 %v3153_v23  ;;  %v3241_v23 = vld [vmem:[#allocation2 + $0x728] ss:$16 sps:$4 sm:$0xff]  }
  0xdb   :  { %1825 = vmatpush2.bf16.msra.mxu0 %v3148_v24  ;;  %v3246_v24 = vld [vmem:[#allocation2 + $0x50c] ss:$16 sps:$4 sm:$0xff]  }
  0xdc   :  { %1866 = vmatpush2.bf16.msra.mxu1 %v3151_v25  ;;  %1876 = vmatprep.subr.bf16.mxu0 %v3156_v26  ;;  %v3249_v25 = vld [vmem:[#allocation2 + $0x70c] ss:$16 sps:$4 sm:$0xff]   ;;  %v3244_v26 = vld [vmem:[#allocation2 + $0x508] ss:$16 sps:$4 sm:$0xff]  }
  0xdd   :  { %1917 = vmatprep.subr.bf16.mxu1 %v3159_v27  ;;  %v3247_v27 = vld [vmem:[#allocation2 + $0x708] ss:$16 sps:$4 sm:$0xff]  }
  0xde   :  { %1827 = vmatmul.mubr.bf16.vlgmr.msra.gmra.mxu0 %v3441_v8  ;;  %v3177_v8 = vld [vmem:[#allocation2 + $0x68c] ss:$16 sps:$4 sm:$0xff]  }
  0xdf   :  { %1868 = vmatmul.mubr.bf16.vlgmr.msra.gmra.mxu1 %v3443_v9  ;;  %1877 = vmatpush1.bf16.msra.mxu0 %v3154_v28  ;;  %v3172_v9 = vld [vmem:[#allocation2 + $0x488] ss:$16 sps:$4 sm:$0xff]  }
  0xe0   :  { %1918 = vmatpush1.bf16.msra.mxu1 %v3157_v29  ;;  %1878 = vmatprep.subr.bf16.mxu0 %v3162_v30  ;;  %v3250_v28 = vld [vmem:[#allocation5 + $0x78] sm:$0xff]   ;;  %v3252_v30 = vld [vmem:[#allocation5 + $0x70] sm:$0xff]  }
  0xe1   :  { %1919 = vmatprep.subr.bf16.mxu1 %v3165_v31  ;;  %1908 = vmatprep.mubr.bf16.mxu0 %v3450_v37  ;;  %v3178_v37 = vld [vmem:[#allocation2 + $0x468] ss:$16 sps:$4 sm:$0xff]  }
  0xe2   :  { %1949 = vmatprep.mubr.bf16.mxu1 %v3455_v40  ;;  %v3181_v40 = vld [vmem:[#allocation2 + $0x668] ss:$16 sps:$4 sm:$0xff]  }
  0xe3   :  { %1879 = vmatpush1.bf16.msra.mxu0 %v3160_v32  ;;  %v3251_v29 = vld [vmem:[#allocation5 + $0x38] sm:$0xff]  }
  0xe4   :  { %1920 = vmatpush1.bf16.msra.mxu1 %v3163_v33  ;;  %1880 = vmatprep.subr.bf16.mxu0 %v3168_v34  ;;  %v3253_v33 = vld [vmem:[#allocation5 + $0x30] sm:$0xff]  }
  0xe5   :  { %1921 = vmatprep.subr.bf16.mxu1 %v3171_v35 }
  0xe7   :  { %1881 = vmatpush1.bf16.msra.mxu0 %v3166_v36  ;;  %v3254_v36 = vld [vmem:[#allocation5 + $0x68] sm:$0xff]  }
  0xe8   :  { %1922 = vmatpush1.bf16.msra.mxu1 %v3169_v38  ;;  %1882 = vmatprep.subr.bf16.mxu0 %v3174_v39 }
  0xe9   :  { %1923 = vmatprep.subr.bf16.mxu1 %v3177_v8  ;;  %v3255_v8 = vld [vmem:[#allocation5 + $0x28] sm:$0xff]  }
  0xeb   :  { %1883 = vmatpush1.bf16.msra.mxu0 %v3172_v9 }
  0xec   :  { %1924 = vmatpush1.bf16.msra.mxu1 %v3175_v49  ;;  %1884 = vmatprep.subr.bf16.mxu0 %v3180_v52  ;;  %v3256_v52 = vld [vmem:[#allocation5 + $0x60] sm:$0xff]  }
  0xed   :  { %1925 = vmatprep.subr.bf16.mxu1 %v3183_v41  ;;  %v3257_v41 = vld [vmem:[#allocation5 + $0x20] sm:$0xff]  }
  0xef   :  { %1885 = vmatpush1.bf16.msra.mxu0 %v3178_v37  ;;  %v3260_v37 = vld [vmem:[#allocation5 + $0x50] sm:$0xff]  }
  0xf0   :  { %1926 = vmatpush1.bf16.msra.mxu1 %v3181_v40  ;;  %1886 = vmatprep.subr.bf16.mxu0 %v3186_v42  ;;  %v3261_v40 = vld [vmem:[#allocation5 + $0x10] sm:$0xff]   ;;  %v3262_v42 = vld [vmem:[#allocation5 + $0x48] sm:$0xff]  }
  0xf1   :  { %1927 = vmatprep.subr.bf16.mxu1 %v3189_v43  ;;  %v3263_v43 = vld [vmem:[#allocation5 + $0x8] sm:$0xff]  }
  0xf3   :  { %1887 = vmatpush1.bf16.msra.mxu0 %v3184_v44  ;;  %v3264_v44 = vld [vmem:[#allocation5 + $0x40] sm:$0xff]  }
  0xf4   :  { %1928 = vmatpush1.bf16.msra.mxu1 %v3187_v45  ;;  %1888 = vmatprep.subr.bf16.mxu0 %v3192_v46  ;;  %v3265_v45 = vld [vmem:[#allocation5] sm:$0xff]   ;;  %v330_v46 = vlaneseq }
  0xf5   :  { %1929 = vmatprep.subr.bf16.mxu1 %v3195_v47 }
  0xf6   :  { %v3480_v47 = vshrl.u32 %v330_v46, 7 }
  0xf7   :  { %1889 = vmatpush1.bf16.msra.mxu0 %v3190_v48 }
  0xf8   :  { %1930 = vmatpush1.bf16.msra.mxu1 %v3193_v50  ;;  %1890 = vmatprep.subr.bf16.mxu0 %v3198_v51  ;;  %v332_v48 = vsub.s32 0, %v3480_v47  ;;  %v3486_v50 = vld [vmem:[%s3531_s2] sm:$0xf]  ;;  %v336_v51 = vsub.s32 1, %v3480_v47 }
  0xf9   :  { %1931 = vmatprep.subr.bf16.mxu1 %v3201_v53 }
  0xfa   :  { %v333_v53 = vrot.slane %v3486_v50, %v332_v48 }
  0xfb   :  { %1891 = vmatpush1.bf16.msra.mxu0 %v3196_v54  ;;  %v337_v54 = vrot.slane %v3486_v50, %v336_v51 }
  0xfc   :  { %1932 = vmatpush1.bf16.msra.mxu1 %v3199_v55  ;;  %1892 = vmatprep.subr.bf16.mxu0 %v3204_v56 }
  0xfd   :  { %1933 = vmatprep.subr.bf16.mxu1 %v3207_v57 }
  0xff   :  { %1893 = vmatpush2.bf16.msra.mxu0 %v3202_v58 }
 0x100   :  { %1934 = vmatpush2.bf16.msra.mxu1 %v3205_v59  ;;  %1894 = vmatprep.subr.bf16.mxu0 %v3210_v60 }
 0x101   :  { %1935 = vmatprep.subr.bf16.mxu1 %v3213_v61 }
 0x103   :  { %1895 = vmatpush2.bf16.msra.mxu0 %v3208_v62 }
 0x104   :  { %1936 = vmatpush2.bf16.msra.mxu1 %v3211_v63  ;;  %1896 = vmatprep.subr.bf16.mxu0 %v3216_v0 }
 0x105   :  { %1937 = vmatprep.subr.bf16.mxu1 %v3219_v1 }
 0x107   :  { %1897 = vmatpush2.bf16.msra.mxu0 %v3214_v2 }
 0x108   :  { %1938 = vmatpush2.bf16.msra.mxu1 %v3217_v3  ;;  %1898 = vmatprep.subr.bf16.mxu0 %v3222_v4  ;;  %v3266_v4 = vld [vmem:[#allocation5 + $0xf8] sm:$0xff]  }
 0x109   :  { %1939 = vmatprep.subr.bf16.mxu1 %v3225_v5 }
 0x10b   :  { %1899 = vmatpush2.bf16.msra.mxu0 %v3220_v6 }
 0x10c   :  { %1940 = vmatpush2.bf16.msra.mxu1 %v3223_v7  ;;  %1900 = vmatprep.subr.bf16.mxu0 %v3228_v10  ;;  %v3267_v7 = vld [vmem:[#allocation5 + $0xb8] sm:$0xff]  }
 0x10d   :  { %1941 = vmatprep.subr.bf16.mxu1 %v3231_v11 }
 0x10f   :  { %1901 = vmatpush2.bf16.msra.mxu0 %v3226_v12 }
 0x110   :  { %1942 = vmatpush2.bf16.msra.mxu1 %v3229_v13  ;;  %1902 = vmatprep.subr.bf16.mxu0 %v3234_v14  ;;  %v3268_v14 = vld [vmem:[#allocation5 + $0xf0] sm:$0xff]  }
 0x111   :  { %1943 = vmatprep.subr.bf16.mxu1 %v3237_v15 }
 0x113   :  { %1903 = vmatpush2.bf16.msra.mxu0 %v3232_v16 }
 0x114   :  { %1944 = vmatpush2.bf16.msra.mxu1 %v3235_v17  ;;  %1904 = vmatprep.subr.bf16.mxu0 %v3240_v18  ;;  %v3269_v17 = vld [vmem:[#allocation5 + $0xb0] sm:$0xff]  }
 0x115   :  { %1945 = vmatprep.subr.bf16.mxu1 %v3243_v19 }
 0x117   :  { %1905 = vmatpush2.bf16.msra.mxu0 %v3238_v22  ;;  %v3270_v22 = vld [vmem:[#allocation5 + $0xe8] sm:$0xff]  }
 0x118   :  { %1946 = vmatpush2.bf16.msra.mxu1 %v3241_v23  ;;  %1906 = vmatprep.subr.bf16.mxu0 %v3246_v24 }
 0x119   :  { %1947 = vmatprep.subr.bf16.mxu1 %v3249_v25  ;;  %v3271_v25 = vld [vmem:[#allocation5 + $0xa8] sm:$0xff]  }
 0x11b   :  { %1907 = vmatpush2.bf16.msra.mxu0 %v3244_v26 }
 0x11c   :  { %1948 = vmatpush2.bf16.msra.mxu1 %v3247_v27  ;;  %2784 = vmatprep.subr.bf16.mxu0 %v3250_v28  ;;  %v3272_v27 = vld [vmem:[#allocation5 + $0xe0] sm:$0xff]  }
 0x11d   :  { %2806 = vmatprep.subr.bf16.mxu1 %v3266_v4  ;;  %v3273_v28 = vld [vmem:[#allocation5 + $0xa0] sm:$0xff]  }
 0x11e   :  { %v1664_v31 = vpop.f32.mrf.mxu0  ;;  %1909 = vmatmul.mubr.bf16.vlgmr.msra.gmra.mxu0 %v3465_v20  ;;  %v3258_v20 = vld [vmem:[#allocation5 + $0x58] sm:$0xff]  }
 0x11f   :  { %v1705_v32 = vpop.f32.mrf.mxu1  ;;  %1950 = vmatmul.mubr.bf16.vlgmr.msra.gmra.mxu1 %v3467_v21  ;;  %2785 = vmatpush3.bf16.msra.mxu0 %v3251_v29  ;;  %v3259_v21 = vld [vmem:[#allocation5 + $0x18] sm:$0xff]   ;;  %v1665_v55 = vadd.f32 %v1664_v31, %v333_v53  ;;  %v3276_v31 = vld [vmem:[#allocation5 + $0xd0] sm:$0xff]  }
 0x120   :  { %v1666_v34 = vpop.f32.mrf.mxu0  ;;  %2786 = vmatprep.subr.bf16.mxu0 %v3252_v30  ;;  %2807 = vmatpush3.bf16.msra.mxu1 %v3267_v7  ;;  %v3274_v29 = vld [vmem:[#allocation5 + $0xd8] sm:$0xff]  }
 0x121   :  { %v1707_v35 = vpop.f32.mrf.mxu1  ;;  %v1667_v56 = vadd.f32 %v1666_v34, %v337_v54  ;;  %v1706_v57 = vadd.f32 %v1705_v32, %v1665_v55  ;;  %2808 = vmatprep.subr.bf16.mxu1 %v3268_v14  ;;  %v3275_v30 = vld [vmem:[#allocation5 + $0x98] sm:$0xff]   ;;  %v3277_v32 = vld [vmem:[#allocation5 + $0x90] sm:$0xff]   ;;  %v3279_v34 = vld [vmem:[#allocation5 + $0x88] sm:$0xff]   ;;  %v340_v54 = vsub.s32 2, %v3480_v47  ;;  %v344_v55 = vsub.s32 3, %v3480_v47 }
 0x122   :  { %v1668_v38 = vpop.f32.mrf.mxu0 }
 0x123   :  { %v1709_v39 = vpop.f32.mrf.mxu1  ;;  %2787 = vmatpush3.bf16.msra.mxu0 %v3253_v33  ;;  %v1708_v60 = vadd.f32 %v1707_v35, %v1667_v56  ;;  %v3278_v33 = vld [vmem:[#allocation5 + $0xc8] sm:$0xff]   ;;  %v341_v56 = vrot.slane %v3486_v50, %v340_v54 }
 0x124   :  { %v1669_v9 = vpop.f32.mrf.mxu0  ;;  %2788 = vmatprep.subr.bf16.mxu0 %v3254_v36  ;;  %2809 = vmatpush3.bf16.msra.mxu1 %v3269_v17  ;;  %v3280_v36 = vld [vmem:[#allocation5 + $0xc0] sm:$0xff]  }
 0x125   :  { %v1710_v49 = vpop.f32.mrf.mxu1  ;;  %2810 = vmatprep.subr.bf16.mxu1 %v3270_v22 }
 0x127   :  { %2789 = vmatpush3.bf16.msra.mxu0 %v3255_v8 }
 0x128   :  { %2790 = vmatprep.subr.bf16.mxu0 %v3256_v52  ;;  %2811 = vmatpush3.bf16.msra.mxu1 %v3271_v25  ;;  %v3281_v52 = vld [vmem:[#allocation5 + $0x80] sm:$0xff]  }
 0x129   :  { %2812 = vmatprep.subr.bf16.mxu1 %v3272_v27 }
 0x12b   :  { %2791 = vmatpush3.bf16.msra.mxu0 %v3257_v41 }
 0x12c   :  { %2792 = vmatprep.subr.bf16.mxu0 %v3258_v20  ;;  %2813 = vmatpush3.bf16.msra.mxu1 %v3273_v28 }
 0x12d   :  { %2814 = vmatprep.subr.bf16.mxu1 %v3274_v29 }
 0x12f   :  { %2793 = vmatpush3.bf16.msra.mxu0 %v3259_v21 }
 0x130   :  { %2794 = vmatprep.subr.bf16.mxu0 %v3260_v37  ;;  %2815 = vmatpush3.bf16.msra.mxu1 %v3275_v30 }
 0x131   :  { %2816 = vmatprep.subr.bf16.mxu1 %v3276_v31 }
 0x133   :  { %2795 = vmatpush3.bf16.msra.mxu0 %v3261_v40 }
 0x134   :  { %2796 = vmatprep.subr.bf16.mxu0 %v3262_v42  ;;  %2817 = vmatpush3.bf16.msra.mxu1 %v3277_v32 }
 0x135   :  { %2818 = vmatprep.subr.bf16.mxu1 %v3278_v33 }
 0x137   :  { %2797 = vmatpush3.bf16.msra.mxu0 %v3263_v43 }
 0x138   :  { %2798 = vmatprep.subr.bf16.mxu0 %v3264_v44  ;;  %2819 = vmatpush3.bf16.msra.mxu1 %v3279_v34 }
 0x139   :  { %2820 = vmatprep.subr.bf16.mxu1 %v3280_v36  ;;  %v3282_v36 = vld [vmem:[%s3534_s5 + $0x38] sm:$0xff]  }
 0x13b   :  { %2799 = vmatpush3.bf16.msra.mxu0 %v3265_v45 }
 0x13c   :  { %2821 = vmatpush3.bf16.msra.mxu1 %v3281_v52  ;;  %v3286_v52 = vld [vmem:[%s3534_s5 + $0x18] sm:$0xff]  }
 0x15e   :  { %v1746_v58 = vpop.f32.mrf.mxu0 }
 0x15f   :  { %v1787_v59 = vpop.f32.mrf.mxu1  ;;  %v1747_v61 = vadd.f32 %v1746_v58, %v1706_v57  ;;  %v345_v57 = vrot.slane %v3486_v50, %v344_v55 }
 0x160   :  { %v1748_v62 = vpop.f32.mrf.mxu0 }
 0x161   :  { %v1789_v63 = vpop.f32.mrf.mxu1  ;;  %v1788_v0 = vadd.f32 %v1787_v59, %v1747_v61  ;;  %v1749_v1 = vadd.f32 %v1748_v62, %v1708_v60 }
 0x162   :  { %v1750_v2 = vpop.f32.mrf.mxu0 }
 0x163   :  { %v1791_v3 = vpop.f32.mrf.mxu1  ;;  %v1962_v5 = vmul.f32 %v1788_v0, %v1788_v0  ;;  %v1790_v6 = vadd.f32 %v1789_v63, %v1749_v1  ;;  %v1958_v8 = vmul.f32 0.5, %v1788_v0 }
 0x164   :  { %v1751_v10 = vpop.f32.mrf.mxu0 }
 0x165   :  { %v1792_v11 = vpop.f32.mrf.mxu1  ;;  %v1966_v12 = vmul.f32 %v1962_v5, %v1788_v0  ;;  %v1963_v13 = vmul.f32 %v1790_v6, %v1790_v6  ;;  %v1959_v9 = vmul.f32 0.5, %v1790_v6 }
 0x167   :  { %v1970_v15 = vmul.f32 0.044715, %v1966_v12  ;;  %v1967_v16 = vmul.f32 %v1963_v13, %v1790_v6 }
 0x169   :  { %v1974_v18 = vadd.f32 %v1970_v15, %v1788_v0  ;;  %v1971_v19 = vmul.f32 0.044715, %v1967_v16 }
 0x16b   :  { %v1978_v23 = vmul.f32 0.7978846, %v1974_v18  ;;  %v1975_v24 = vadd.f32 %v1971_v19, %v1790_v6 }
 0x16d   :  { %3290 = vtanh.f32 %v1978_v23  ;;  %v1979_v26 = vmul.f32 0.7978846, %v1975_v24 }
 0x16f   :  { %3292 = vtanh.f32 %v1979_v26 }
 0x17a   :  { %v3291_v35 = vpop.eup %3290 }
 0x17b   :  { %v1986_v38 = vadd.f32 1.0, %v3291_v35 }
 0x17c   :  { %v3293_v39 = vpop.eup %3292 }
 0x17d   :  { %v1987_v49 = vadd.f32 1.0, %v3293_v39  ;;  %v1990_v41 = vmul.f32 %v1986_v38, %v1958_v8  ;;  %v3374_v38 = vmov 0.0   ;;  %v3283_v8 = vld [vmem:[%s3534_s5 + $0x30] sm:$0xff]  }
 0x17e   :  { %2837 = vmatprep.subr.bf16.mxu0 %v3374_v38 }
 0x17f   :  { %v1991_v20 = vmul.f32 %v1987_v49, %v1959_v9  ;;  %v1994_v37 = vpack.c.bf16 %v1990_v41, %v1990_v41  ;;  %v3284_v9 = vld [vmem:[%s3534_s5 + $0x28] sm:$0xff]   ;;  %v3285_v49 = vld [vmem:[%s3534_s5 + $0x20] sm:$0xff]   ;;  %v3287_v41 = vld [vmem:[%s3534_s5 + $0x10] sm:$0xff]  }
 0x181   :  { %v1995_v21 = vpack.c.bf16 %v1991_v20, %v1991_v20  ;;  %v3288_v20 = vld [vmem:[%s3534_s5 + $0x8] sm:$0xff]  }
 0x183   :  { %2293 = vmatprep.mubr.bf16.mxu0 %v1995_v21  ;;  %v3289_v21 = vld [vmem:[%s3534_s5] sm:$0xff]  }
 0x184   :  { %2294 = vmatmul.mubr.bf16.vlgmr.msra.gmra.mxu0 %v1994_v37  ;;  %v2742_v37 = vld [vmem:[%s3533_s4] ss:$0 sm:$0xff] }
 0x185   :  { %2838 = vmatpush3.bf16.msra.mxu0 %v3282_v36  ;;  %2853 = vmatprep.mubr.msk.bf16.mxu0 %vm3375_vm0, %v3374_v38 }
 0x186   :  { %2839 = vmatprep.subr.bf16.mxu0 %v3374_v38 }
 0x189   :  { %2840 = vmatpush3.bf16.msra.mxu0 %v3283_v8 }
 0x18a   :  { %2841 = vmatprep.subr.bf16.mxu0 %v3374_v38 }
 0x18d   :  { %2842 = vmatpush3.bf16.msra.mxu0 %v3284_v9 }
 0x18e   :  { %2843 = vmatprep.subr.bf16.mxu0 %v3374_v38 }
 0x191   :  { %2844 = vmatpush3.bf16.msra.mxu0 %v3285_v49 }
 0x192   :  { %2845 = vmatprep.subr.bf16.mxu0 %v3374_v38 }
 0x195   :  { %2846 = vmatpush3.bf16.msra.mxu0 %v3286_v52 }
 0x196   :  { %2847 = vmatprep.subr.bf16.mxu0 %v3374_v38 }
 0x199   :  { %2848 = vmatpush3.bf16.msra.mxu0 %v3287_v41 }
 0x19a   :  { %2849 = vmatprep.subr.bf16.mxu0 %v3374_v38 }
 0x19d   :  { %2850 = vmatpush3.bf16.msra.mxu0 %v3288_v20 }
 0x19e   :  { %v1828_v40 = vpop.f32.mrf.mxu0  ;;  %2851 = vmatprep.subr.bf16.mxu0 %v3374_v38 }
 0x19f   :  { %v1869_v42 = vpop.f32.mrf.mxu1  ;;  %v1829_v58 = vadd.f32 %v1828_v40, %v341_v56 }
 0x1a0   :  { %v1830_v43 = vpop.f32.mrf.mxu0 }
 0x1a1   :  { %v1871_v44 = vpop.f32.mrf.mxu1  ;;  %v1831_v59 = vadd.f32 %v1830_v43, %v345_v57  ;;  %v1870_v60 = vadd.f32 %v1869_v42, %v1829_v58  ;;  %2852 = vmatpush3.bf16.msra.mxu0 %v3289_v21 }
 0x1a2   :  { %v1832_v45 = vpop.f32.mrf.mxu0 }
 0x1a3   :  { %v1873_v48 = vpop.f32.mrf.mxu1  ;;  %v1872_v63 = vadd.f32 %v1871_v44, %v1831_v59 }
 0x1a4   :  { %v1833_v51 = vpop.f32.mrf.mxu0 }
 0x1a5   :  { %v1874_v53 = vpop.f32.mrf.mxu1 }
 0x1de   :  { %v1910_v61 = vpop.f32.mrf.mxu0 }
 0x1df   :  { %v1951_v62 = vpop.f32.mrf.mxu1  ;;  %v1911_v0 = vadd.f32 %v1910_v61, %v1870_v60 }
 0x1e0   :  { %v1912_v1 = vpop.f32.mrf.mxu0 }
 0x1e1   :  { %v1953_v2 = vpop.f32.mrf.mxu1  ;;  %v1952_v3 = vadd.f32 %v1951_v62, %v1911_v0  ;;  %v1913_v4 = vadd.f32 %v1912_v1, %v1872_v63  ;;  %v2775_v63 = vld [vmem:[%s3535_s6] ss:$0 sm:$0xff] }
 0x1e2   :  { %v1914_v5 = vpop.f32.mrf.mxu0 }
 0x1e3   :  { %v1955_v6 = vpop.f32.mrf.mxu1  ;;  %v1964_v7 = vmul.f32 %v1952_v3, %v1952_v3  ;;  %v1954_v10 = vadd.f32 %v1953_v2, %v1913_v4  ;;  %v1960_v25 = vmul.f32 0.5, %v1952_v3 }
 0x1e4   :  { %v1915_v47 = vpop.f32.mrf.mxu0  ;;  %v2463_v6 = vand.u32 127, %v330_v46 }
 0x1e5   :  { %v1956_v11 = vpop.f32.mrf.mxu1  ;;  %v1968_v12 = vmul.f32 %v1964_v7, %v1952_v3  ;;  %v1965_v13 = vmul.f32 %v1954_v10, %v1954_v10  ;;  %v1961_v26 = vmul.f32 0.5, %v1954_v10 }
 0x1e6   :  { %vm2464_vm1 = vcmp.lt.s32.totalorder %v2463_v6, 16 }
 0x1e7   :  { %v1972_v50 = vmul.f32 0.044715, %v1968_v12  ;;  %v1969_v14 = vmul.f32 %v1965_v13, %v1954_v10 }
 0x1e9   :  { %v1976_v15 = vadd.f32 %v1972_v50, %v1952_v3  ;;  %v1973_v16 = vmul.f32 0.044715, %v1969_v14 }
 0x1eb   :  { %v1980_v17 = vmul.f32 0.7978846, %v1976_v15  ;;  %v1977_v18 = vadd.f32 %v1973_v16, %v1954_v10 }
 0x1ed   :  { %3294 = vtanh.f32 %v1980_v17  ;;  %v1981_v19 = vmul.f32 0.7978846, %v1977_v18 }
 0x1ef   :  { %3296 = vtanh.f32 %v1981_v19 }
 0x1fa   :  { %v3295_v22 = vpop.eup %3294 }
 0x1fb   :  { %v1988_v23 = vadd.f32 1.0, %v3295_v22 }
 0x1fc   :  { %v3297_v24 = vpop.eup %3296 }
 0x1fd   :  { %v1989_v27 = vadd.f32 1.0, %v3297_v24  ;;  %v1992_v28 = vmul.f32 %v1988_v23, %v1960_v25 }
 0x1ff   :  { %v1993_v29 = vmul.f32 %v1989_v27, %v1961_v26  ;;  %v1996_v31 = vpack.c.bf16 %v1992_v28, %v1992_v28 }
 0x201   :  { %v1997_v30 = vpack.c.bf16 %v1993_v29, %v1993_v29 }
 0x203   :  { %2333 = vmatprep.mubr.bf16.mxu1 %v1997_v30 }
 0x204   :  { %2334 = vmatmul.mubr.bf16.vlgmr.msra.gmra.mxu1 %v1996_v31 }
 0x244   :  { %v2800_v32 = vpop.f32.mrf.mxu0 }
 0x246   :  { %v2801_v33 = vpop.f32.mrf.mxu0 }
 0x247   :  { %v2802_v34 = vadd.f32 %v2801_v33, %v2800_v32 }
 0x248   :  { %v2803_v35 = vpop.f32.mrf.mxu0 }
 0x249   :  { %v2296_v43 = vadd.f32 %v2802_v34, %v2742_v37 }
 0x24a   :  { %v2804_v39 = vpop.f32.mrf.mxu0 }
 0x2c4   :  { %v2822_v40 = vpop.f32.mrf.mxu1 }
 0x2c6   :  { %v2823_v42 = vpop.f32.mrf.mxu1 }
 0x2c7   :  { %v2824_v44 = vadd.f32 %v2823_v42, %v2822_v40 }
 0x2c8   :  { %v2825_v45 = vpop.f32.mrf.mxu1 }
 0x2c9   :  { %v2336_v48 = vadd.f32 %v2824_v44, %v2296_v43 }
 0x2ca   :  { %v2826_v51 = vpop.f32.mrf.mxu1 }
 0x2cb   :  { %v2342_v53 = vmul.f32 %v2336_v48, %v2336_v48  ;;  %v2341_v59 = vmul.f32 0.5, %v2336_v48 }
 0x2cd   :  { %v2343_v54 = vmul.f32 %v2342_v53, %v2336_v48 }
 0x2cf   :  { %v2344_v55 = vmul.f32 0.044715, %v2343_v54 }
 0x2d1   :  { %v2345_v56 = vadd.f32 %v2344_v55, %v2336_v48 }
 0x2d3   :  { %v2346_v57 = vmul.f32 0.7978846, %v2345_v56 }
 0x2d5   :  { %3298 = vtanh.f32 %v2346_v57 }
 0x2e2   :  { %v3299_v58 = vpop.eup %3298 }
 0x2e3   :  { %v2348_v60 = vadd.f32 1.0, %v3299_v58 }
 0x2e5   :  { %v2349_v61 = vmul.f32 %v2348_v60, %v2341_v59 }
 0x2e7   :  { %v2350_v62 = vpack.c.bf16 %v2349_v61, %v2349_v61 }
 0x2e9   :  { %2854 = vmatmul.mubr.bf16.vlgmr.msra.gmra.mxu0 %v2350_v62 }
 0x3a9   :  { %v2456_v0 = vpop.f32.mrf.mxu0 }
 0x3aa   :  { %v2457_v1 = vadd.f32 %v2775_v63, %v2456_v0 }
 0x3ab   :  { %v2855_v2 = vpop.f32.mrf.mxu0 }
 0x3ac   :  { %v2465_v3 = vmul.f32 1.442695, %v2457_v1 }
 0x3ad   :  { %v2459_v4 = vpop.f32.mrf.mxu0 }
 0x3ae   :  { %3300 = vpow2.f32 %v2465_v3 }
 0x3af   :  { %v2856_v5 = vpop.f32.mrf.mxu0 }
 0x3bb   :  { %v3301_v7 = vpop.eup %3300 }
 0x3bc   :  { %v2467_v10 = vsel %vm2464_vm1, %v2457_v1, %v3301_v7 }
 0x3bd   :  { %2469 = vst.msk [vmem:[#allocation7] sm:$0xff] %vm2468_vm2, %v2467_v10 }
 0x3be   :  { %3353 = shalt.err (!%p3350_p0)
}
 0x3bf   :  { %2479 = dma.vmem_to_hbm [thread:$0]  %s2477_s23, 128, %s3536_s7, [#allocation4]  }
 0x3c0   :  { %3366 = dma.done.wait [#allocation4], 128  }
 0x3c1   :  { %3367 = vsyncadd [#allocation4], 4294967168 }
 0x3c2   :  { %2483 = vsyncpa [#allocation3], 1 }
 0x3c3   :  { %2484 = vsyncpa [#allocation6], 1 }
 0x3c4   :  { %2485 = vsyncpa [#allocation4], 1 }

</bundles_post_ra>
